<compile_context>
chip_gen: v7x
topology: tpu7x:2x2x1
jax: 0.10.0
libtpu: 0.0.40
codegen_flags: <defaults>
</compile_context>

<pallas_src>
import functools

import jax
import jax.numpy as jnp
from jax.experimental import pallas as pl
from jax.experimental.pallas import tpu as pltpu


# ----------------------------------------------------------------------------
# Kernel
# ----------------------------------------------------------------------------
def _make_kernel(n_layers: int, hidden: int, seq_len: int, batch: int):
    """Single-invocation kernel: full LSTM time recurrence + batched FC.

    Ref order:
      inputs : x_tm (T,B,E), z (B,n_z), h0 (L,B,H), c0 (L,B,H),
               [w_cat_l (in_l+H, 4H), b_l (1, 4H)] * n_layers,
               w_z (n_z, 4H), w_fc (H, V), b_fc (1, V)
      outputs: logits_flat (T*B, V), h_n (L,B,H), c_n (L,B,H)
      scratch: h_top (T, B, H) VMEM  (top-layer hidden per timestep)
    """

    def kernel(x_ref, z_ref, h0_ref, c0_ref, *refs):
        idx = 0
        w_cat_refs, b_refs = [], []
        for _ in range(n_layers):
            w_cat_refs.append(refs[idx]); idx += 1
            b_refs.append(refs[idx]); idx += 1
        w_z_ref = refs[idx]; idx += 1
        w_fc_ref = refs[idx]; idx += 1
        b_fc_ref = refs[idx]; idx += 1
        logits_ref = refs[idx]; idx += 1
        h_out_ref = refs[idx]; idx += 1
        c_out_ref = refs[idx]; idx += 1
        h_top = refs[idx]  # VMEM scratch (T, B, H)

        # ---- hoisted loads: weights live in vregs across the whole time loop ----
        w_cats = [r[...] for r in w_cat_refs]
        # Time-invariant z contribution folded into the layer-0 bias (computed once).
        zb0 = (jnp.dot(z_ref[...], w_z_ref[...], preferred_element_type=jnp.float32)
               + b_refs[0][...])                                  # (B, 4H)
        biases = [zb0] + [jnp.broadcast_to(b_refs[l][...], (batch, 4 * hidden))
                          for l in range(1, n_layers)]

        def step(t, carry):
            hs, cs = carry                      # tuples of (B, H)
            inp = x_ref[t]                      # (B, E) current timestep
            new_hs, new_cs = [], []
            for l in range(n_layers):
                h_prev, c_prev = hs[l], cs[l]
                xin = jnp.concatenate([inp, h_prev], axis=-1)     # (B, in_l + H)
                gates = jnp.dot(xin, w_cats[l],
                                preferred_element_type=jnp.float32) + biases[l]
                # Full-vreg nonlinearities (2 EUP passes), slice per-gate afterwards.
                sg = jax.nn.sigmoid(gates)
                tg = jnp.tanh(gates)
                # PyTorch LSTM gate order: i, f, g, o
                i_g = sg[:, 0 * hidden:1 * hidden]
                f_g = sg[:, 1 * hidden:2 * hidden]
                g_g = tg[:, 2 * hidden:3 * hidden]
                o_g = sg[:, 3 * hidden:4 * hidden]
                c_new = f_g * c_prev + i_g * g_g
                h_new = o_g * jnp.tanh(c_new)
                new_hs.append(h_new)
                new_cs.append(c_new)
                inp = h_new
            h_top[t] = inp                      # stash top-layer output for batched FC
            return tuple(new_hs), tuple(new_cs)

        init = (tuple(h0_ref[l] for l in range(n_layers)),
                tuple(c0_ref[l] for l in range(n_layers)))
        h_fin, c_fin = jax.lax.fori_loop(0, seq_len, step, init, unroll=True)

        # One batched FC over all timesteps: (T*B, H) @ (H, V) + b.
        h_flat = jnp.concatenate([h_top[t] for t in range(seq_len)], axis=0)
        logits_ref[...] = (jnp.dot(h_flat, w_fc_ref[...],
                                   preferred_element_type=jnp.float32)
                           + b_fc_ref[...])

        # Final (h_n, c_n).
        for l in range(n_layers):
            h_out_ref[l] = h_fin[l]
            c_out_ref[l] = c_fin[l]

    return kernel


# ----------------------------------------------------------------------------
# Wrapper (glue in plain JAX)
# ----------------------------------------------------------------------------
@functools.partial(jax.jit, static_argnames=("n_layers", "hidden", "n_vocab"))
def generator_forward(x, z, layer_weights, fc_weights, g_hidden=None, *,
                      n_layers, hidden, n_vocab):
    """x: (B, T, n_embed) f32, z: (B, n_z) f32.  Returns (logits, (h_n, c_n))."""
    B, T, n_embed = x.shape

    x_tm = jnp.transpose(x, (1, 0, 2))                 # (T, B, E) time-major

    if g_hidden is None:                               # matches init_hidden()
        h0 = jnp.zeros((n_layers, B, hidden), jnp.float32)
        c0 = jnp.zeros((n_layers, B, hidden), jnp.float32)
    else:
        h0, c0 = g_hidden

    # Layer 0: split the z columns out of w_ih; fuse the x part with w_hh.
    w_ih0, w_hh0, b0 = layer_weights[0]
    w_x, w_z = w_ih0[:n_embed], w_ih0[n_embed:]
    weight_args = [jnp.concatenate([w_x, w_hh0], axis=0), b0]
    for l in range(1, n_layers):
        w_ih, w_hh, b = layer_weights[l]
        weight_args += [jnp.concatenate([w_ih, w_hh], axis=0), b]
    w_fc, b_fc = fc_weights
    weight_args += [w_z, w_fc, b_fc]

    vmem = pl.BlockSpec(memory_space=pltpu.MemorySpace.VMEM)
    n_in = 4 + len(weight_args)

    kernel = _make_kernel(n_layers, hidden, T, B)
    logits_flat, h_n, c_n = pl.pallas_call(
        kernel,
        out_shape=(
            jax.ShapeDtypeStruct((T * B, n_vocab), jnp.float32),       # logits (t-major rows)
            jax.ShapeDtypeStruct((n_layers, B, hidden), jnp.float32),  # h_n
            jax.ShapeDtypeStruct((n_layers, B, hidden), jnp.float32),  # c_n
        ),
        in_specs=[vmem] * n_in,
        out_specs=(vmem, vmem, vmem),
        scratch_shapes=[pltpu.VMEM((T, B, hidden), jnp.float32)],       # top-layer h_t
    )(x_tm, z, h0, c0, *weight_args)

    logits = jnp.transpose(logits_flat.reshape(T, B, n_vocab), (1, 0, 2))  # (B, T, V)
    return logits, (h_n, c_n)


# ----------------------------------------------------------------------------
# Pure-JAX reference (for correctness check)
# ----------------------------------------------------------------------------
def generator_reference(x, z, layer_weights, fc_weights, n_layers, hidden):
    B, T, _ = x.shape
    n_z = z.shape[1]
    z_rep = jnp.broadcast_to(z[:, None, :], (B, T, n_z))
    seq = jnp.concatenate([x, z_rep], axis=2)
    h = [jnp.zeros((B, hidden), jnp.float32) for _ in range(n_layers)]
    c = [jnp.zeros((B, hidden), jnp.float32) for _ in range(n_layers)]
    outs = []
    for t in range(T):
        inp = seq[:, t, :]
        for l in range(n_layers):
            w_ih, w_hh, b = layer_weights[l]
            gates = inp @ w_ih + h[l] @ w_hh + b
            i_g = jax.nn.sigmoid(gates[:, :hidden])
            f_g = jax.nn.sigmoid(gates[:, hidden:2 * hidden])
            g_g = jnp.tanh(gates[:, 2 * hidden:3 * hidden])
            o_g = jax.nn.sigmoid(gates[:, 3 * hidden:])
            c[l] = f_g * c[l] + i_g * g_g
            h[l] = o_g * jnp.tanh(c[l])
            inp = h[l]
        outs.append(inp)
    out = jnp.stack(outs, axis=1)
    w_fc, b_fc = fc_weights
    return out @ w_fc + b_fc, (jnp.stack(h), jnp.stack(c))


# ----------------------------------------------------------------------------
# Main
# ----------------------------------------------------------------------------
if __name__ == "__main__":
    # Config (small, consistent with the module's forward):
    B, T = 2, 8
    n_embed, n_z = 16, 8
    n_hidden_G, n_layers_G, n_vocab = 32, 2, 40
    d_in = n_embed + n_z

    key = jax.random.PRNGKey(0)
    keys = jax.random.split(key, 3 + 3 * n_layers_G + 2)
    ki = iter(keys)

    x = jax.random.normal(next(ki), (B, T, n_embed), jnp.float32)
    z = jax.random.normal(next(ki), (B, n_z), jnp.float32)
    _ = next(ki)

    scale = 1.0 / jnp.sqrt(n_hidden_G)
    layer_weights = []
    for l in range(n_layers_G):
        in_dim = d_in if l == 0 else n_hidden_G
        # Stored pre-transposed vs PyTorch: (in_dim, 4H) / (H, 4H); bias = b_ih + b_hh.
        w_ih = jax.random.uniform(next(ki), (in_dim, 4 * n_hidden_G), jnp.float32, -scale, scale)
        w_hh = jax.random.uniform(next(ki), (n_hidden_G, 4 * n_hidden_G), jnp.float32, -scale, scale)
        b = jax.random.uniform(next(ki), (1, 4 * n_hidden_G), jnp.float32, -scale, scale)
        layer_weights.append((w_ih, w_hh, b))
    layer_weights = tuple(layer_weights)

    w_fc = jax.random.uniform(next(ki), (n_hidden_G, n_vocab), jnp.float32, -scale, scale)
    b_fc = jax.random.uniform(next(ki), (1, n_vocab), jnp.float32, -scale, scale)
    fc_weights = (w_fc, b_fc)

    logits, (h_n, c_n) = generator_forward(
        x, z, layer_weights, fc_weights,
        n_layers=n_layers_G, hidden=n_hidden_G, n_vocab=n_vocab,
    )
    jax.block_until_ready((logits, h_n, c_n))

    # Correctness vs pure-JAX reference.
    ref_logits, (ref_h, ref_c) = generator_reference(
        x, z, layer_weights, fc_weights, n_layers_G, n_hidden_G)
    assert logits.shape == (B, T, n_vocab)
    assert h_n.shape == (n_layers_G, B, n_hidden_G)
    assert c_n.shape == (n_layers_G, B, n_hidden_G)
    assert jnp.allclose(logits, ref_logits, atol=1e-4, rtol=1e-4)
    assert jnp.allclose(h_n, ref_h, atol=1e-4, rtol=1e-4)
    assert jnp.allclose(c_n, ref_c, atol=1e-4, rtol=1e-4)

    print("KERNEL_OK")
</pallas_src>

<mosaic_0001>
module attributes {stable_mosaic.version = 11 : i64} {
  func.func @kernel(%arg0: memref<8x2x16xf32, #tpu.memory_space<vmem>>, %arg1: memref<2x8xf32, #tpu.memory_space<vmem>>, %arg2: memref<2x2x32xf32, #tpu.memory_space<vmem>>, %arg3: memref<2x2x32xf32, #tpu.memory_space<vmem>>, %arg4: memref<48x128xf32, #tpu.memory_space<vmem>>, %arg5: memref<1x128xf32, #tpu.memory_space<vmem>>, %arg6: memref<64x128xf32, #tpu.memory_space<vmem>>, %arg7: memref<1x128xf32, #tpu.memory_space<vmem>>, %arg8: memref<8x128xf32, #tpu.memory_space<vmem>>, %arg9: memref<32x40xf32, #tpu.memory_space<vmem>>, %arg10: memref<1x40xf32, #tpu.memory_space<vmem>>, %arg11: memref<16x40xf32, #tpu.memory_space<vmem>>, %arg12: memref<2x2x32xf32, #tpu.memory_space<vmem>>, %arg13: memref<2x2x32xf32, #tpu.memory_space<vmem>>, %arg14: memref<8x2x32xf32, #tpu.memory_space<vmem>>) attributes {dimension_semantics = [], scalar_prefetch = 0 : i64, scratch_operands = 1 : i64, tpu.core_type = #tpu.core_type<tc>} {
    %c0 = arith.constant 0 : index
    %c0_0 = arith.constant 0 : index
    %0 = vector.load %arg4[%c0, %c0_0] : memref<48x128xf32, #tpu.memory_space<vmem>>, vector<48x128xf32>
    %c0_1 = arith.constant 0 : index
    %c0_2 = arith.constant 0 : index
    %1 = vector.load %arg6[%c0_1, %c0_2] : memref<64x128xf32, #tpu.memory_space<vmem>>, vector<64x128xf32>
    %c0_3 = arith.constant 0 : index
    %c0_4 = arith.constant 0 : index
    %2 = vector.load %arg1[%c0_3, %c0_4] : memref<2x8xf32, #tpu.memory_space<vmem>>, vector<2x8xf32>
    %c0_5 = arith.constant 0 : index
    %c0_6 = arith.constant 0 : index
    %3 = vector.load %arg8[%c0_5, %c0_6] : memref<8x128xf32, #tpu.memory_space<vmem>>, vector<8x128xf32>
    %cst = arith.constant dense<0.000000e+00> : vector<2x128xf32>
    %4 = tpu.matmul %2, %3, %cst {dimension_numbers = #tpu.dot_dimension_numbers<[1], [0], [0], [1], [0, 0, 1, 1], [], []>} : vector<2x8xf32>, vector<8x128xf32>, vector<2x128xf32> -> vector<2x128xf32>
    %c0_7 = arith.constant 0 : index
    %c0_8 = arith.constant 0 : index
    %5 = vector.load %arg5[%c0_7, %c0_8] : memref<1x128xf32, #tpu.memory_space<vmem>>, vector<1x128xf32>
    %6 = vector.broadcast %5 : vector<1x128xf32> to vector<2x128xf32>
    %7 = arith.addf %4, %6 : vector<2x128xf32>
    %c0_9 = arith.constant 0 : index
    %c0_10 = arith.constant 0 : index
    %8 = vector.load %arg7[%c0_9, %c0_10] : memref<1x128xf32, #tpu.memory_space<vmem>>, vector<1x128xf32>
    %9 = vector.shape_cast %8 : vector<1x128xf32> to vector<1x128xf32>
    %10 = vector.broadcast %9 : vector<1x128xf32> to vector<2x128xf32>
    %c0_11 = arith.constant 0 : index
    %c0_12 = arith.constant 0 : index
    %c0_13 = arith.constant 0 : index
    %11 = vector.load %arg2[%c0_11, %c0_12, %c0_13] : memref<2x2x32xf32, #tpu.memory_space<vmem>>, vector<1x2x32xf32>
    %12 = vector.shape_cast %11 : vector<1x2x32xf32> to vector<2x32xf32>
    %c1 = arith.constant 1 : index
    %c0_14 = arith.constant 0 : index
    %c0_15 = arith.constant 0 : index
    %13 = vector.load %arg2[%c1, %c0_14, %c0_15] : memref<2x2x32xf32, #tpu.memory_space<vmem>>, vector<1x2x32xf32>
    %14 = vector.shape_cast %13 : vector<1x2x32xf32> to vector<2x32xf32>
    %c0_16 = arith.constant 0 : index
    %c0_17 = arith.constant 0 : index
    %c0_18 = arith.constant 0 : index
    %15 = vector.load %arg3[%c0_16, %c0_17, %c0_18] : memref<2x2x32xf32, #tpu.memory_space<vmem>>, vector<1x2x32xf32>
    %16 = vector.shape_cast %15 : vector<1x2x32xf32> to vector<2x32xf32>
    %c1_19 = arith.constant 1 : index
    %c0_20 = arith.constant 0 : index
    %c0_21 = arith.constant 0 : index
    %17 = vector.load %arg3[%c1_19, %c0_20, %c0_21] : memref<2x2x32xf32, #tpu.memory_space<vmem>>, vector<1x2x32xf32>
    %18 = vector.shape_cast %17 : vector<1x2x32xf32> to vector<2x32xf32>
    %c0_i32 = arith.constant 0 : i32
    %19 = arith.index_cast %c0_i32 : i32 to index
    %c0_22 = arith.constant 0 : index
    %c0_23 = arith.constant 0 : index
    %20 = vector.load %arg0[%19, %c0_22, %c0_23] : memref<8x2x16xf32, #tpu.memory_space<vmem>>, vector<1x2x16xf32>
    %21 = vector.shape_cast %20 : vector<1x2x16xf32> to vector<2x16xf32>
    %22 = tpu.concatenate %21, %12 in 1 : vector<2x16xf32>, vector<2x32xf32> -> vector<2x48xf32>
    %cst_24 = arith.constant dense<0.000000e+00> : vector<2x128xf32>
    %23 = tpu.matmul %22, %0, %cst_24 {dimension_numbers = #tpu.dot_dimension_numbers<[1], [0], [0], [1], [0, 0, 1, 1], [], []>} : vector<2x48xf32>, vector<48x128xf32>, vector<2x128xf32> -> vector<2x128xf32>
    %24 = arith.addf %23, %7 : vector<2x128xf32>
    %25 = arith.negf %24 : vector<2x128xf32>
    %26 = math.exp %25 : vector<2x128xf32>
    %cst_25 = arith.constant 1.000000e+00 : f32
    %27 = vector.broadcast %cst_25 : f32 to vector<2x128xf32>
    %28 = arith.addf %27, %26 : vector<2x128xf32>
    %29 = arith.divf %27, %28 : vector<2x128xf32>
    %30 = math.tanh %24 : vector<2x128xf32>
    %31 = vector.extract_strided_slice %29 {offsets = [0, 0], sizes = [2, 32], strides = [1, 1]} : vector<2x128xf32> to vector<2x32xf32>
    %32 = vector.extract_strided_slice %29 {offsets = [0, 32], sizes = [2, 32], strides = [1, 1]} : vector<2x128xf32> to vector<2x32xf32>
    %33 = vector.extract_strided_slice %30 {offsets = [0, 64], sizes = [2, 32], strides = [1, 1]} : vector<2x128xf32> to vector<2x32xf32>
    %34 = vector.extract_strided_slice %29 {offsets = [0, 96], sizes = [2, 32], strides = [1, 1]} : vector<2x128xf32> to vector<2x32xf32>
    %35 = arith.mulf %32, %16 : vector<2x32xf32>
    %36 = arith.mulf %31, %33 : vector<2x32xf32>
    %37 = arith.addf %35, %36 : vector<2x32xf32>
    %38 = math.tanh %37 : vector<2x32xf32>
    %39 = arith.mulf %34, %38 : vector<2x32xf32>
    %40 = tpu.concatenate %39, %14 in 1 : vector<2x32xf32>, vector<2x32xf32> -> vector<2x64xf32>
    %cst_26 = arith.constant dense<0.000000e+00> : vector<2x128xf32>
    %41 = tpu.matmul %40, %1, %cst_26 {dimension_numbers = #tpu.dot_dimension_numbers<[1], [0], [0], [1], [0, 0, 1, 1], [], []>} : vector<2x64xf32>, vector<64x128xf32>, vector<2x128xf32> -> vector<2x128xf32>
    %42 = arith.addf %41, %10 : vector<2x128xf32>
    %43 = arith.negf %42 : vector<2x128xf32>
    %44 = math.exp %43 : vector<2x128xf32>
    %cst_27 = arith.constant 1.000000e+00 : f32
    %45 = vector.broadcast %cst_27 : f32 to vector<2x128xf32>
    %46 = arith.addf %45, %44 : vector<2x128xf32>
    %47 = arith.divf %45, %46 : vector<2x128xf32>
    %48 = math.tanh %42 : vector<2x128xf32>
    %49 = vector.extract_strided_slice %47 {offsets = [0, 0], sizes = [2, 32], strides = [1, 1]} : vector<2x128xf32> to vector<2x32xf32>
    %50 = vector.extract_strided_slice %47 {offsets = [0, 32], sizes = [2, 32], strides = [1, 1]} : vector<2x128xf32> to vector<2x32xf32>
    %51 = vector.extract_strided_slice %48 {offsets = [0, 64], sizes = [2, 32], strides = [1, 1]} : vector<2x128xf32> to vector<2x32xf32>
    %52 = vector.extract_strided_slice %47 {offsets = [0, 96], sizes = [2, 32], strides = [1, 1]} : vector<2x128xf32> to vector<2x32xf32>
    %53 = arith.mulf %50, %18 : vector<2x32xf32>
    %54 = arith.mulf %49, %51 : vector<2x32xf32>
    %55 = arith.addf %53, %54 : vector<2x32xf32>
    %56 = math.tanh %55 : vector<2x32xf32>
    %57 = arith.mulf %52, %56 : vector<2x32xf32>
    %58 = arith.index_cast %c0_i32 : i32 to index
    %c0_28 = arith.constant 0 : index
    %c0_29 = arith.constant 0 : index
    %59 = vector.load %arg14[%58, %c0_28, %c0_29] : memref<8x2x32xf32, #tpu.memory_space<vmem>>, vector<1x2x32xf32>
    %60 = vector.shape_cast %59 : vector<1x2x32xf32> to vector<2x32xf32>
    %61 = vector.shape_cast %57 : vector<2x32xf32> to vector<1x2x32xf32>
    tpu.vector_store %arg14[%58, %c0_28, %c0_29], %61 {strides = array<i32>} : memref<8x2x32xf32, #tpu.memory_space<vmem>>, vector<1x2x32xf32>,
    %c1_i32 = arith.constant 1 : i32
    %62 = arith.index_cast %c1_i32 : i32 to index
    %c0_30 = arith.constant 0 : index
    %c0_31 = arith.constant 0 : index
    %63 = vector.load %arg0[%62, %c0_30, %c0_31] : memref<8x2x16xf32, #tpu.memory_space<vmem>>, vector<1x2x16xf32>
    %64 = vector.shape_cast %63 : vector<1x2x16xf32> to vector<2x16xf32>
    %65 = tpu.concatenate %64, %39 in 1 : vector<2x16xf32>, vector<2x32xf32> -> vector<2x48xf32>
    %cst_32 = arith.constant dense<0.000000e+00> : vector<2x128xf32>
    %66 = tpu.matmul %65, %0, %cst_32 {dimension_numbers = #tpu.dot_dimension_numbers<[1], [0], [0], [1], [0, 0, 1, 1], [], []>} : vector<2x48xf32>, vector<48x128xf32>, vector<2x128xf32> -> vector<2x128xf32>
    %67 = arith.addf %66, %7 : vector<2x128xf32>
    %68 = arith.negf %67 : vector<2x128xf32>
    %69 = math.exp %68 : vector<2x128xf32>
    %cst_33 = arith.constant 1.000000e+00 : f32
    %70 = vector.broadcast %cst_33 : f32 to vector<2x128xf32>
    %71 = arith.addf %70, %69 : vector<2x128xf32>
    %72 = arith.divf %70, %71 : vector<2x128xf32>
    %73 = math.tanh %67 : vector<2x128xf32>
    %74 = vector.extract_strided_slice %72 {offsets = [0, 0], sizes = [2, 32], strides = [1, 1]} : vector<2x128xf32> to vector<2x32xf32>
    %75 = vector.extract_strided_slice %72 {offsets = [0, 32], sizes = [2, 32], strides = [1, 1]} : vector<2x128xf32> to vector<2x32xf32>
    %76 = vector.extract_strided_slice %73 {offsets = [0, 64], sizes = [2, 32], strides = [1, 1]} : vector<2x128xf32> to vector<2x32xf32>
    %77 = vector.extract_strided_slice %72 {offsets = [0, 96], sizes = [2, 32], strides = [1, 1]} : vector<2x128xf32> to vector<2x32xf32>
    %78 = arith.mulf %75, %37 : vector<2x32xf32>
    %79 = arith.mulf %74, %76 : vector<2x32xf32>
    %80 = arith.addf %78, %79 : vector<2x32xf32>
    %81 = math.tanh %80 : vector<2x32xf32>
    %82 = arith.mulf %77, %81 : vector<2x32xf32>
    %83 = tpu.concatenate %82, %57 in 1 : vector<2x32xf32>, vector<2x32xf32> -> vector<2x64xf32>
    %cst_34 = arith.constant dense<0.000000e+00> : vector<2x128xf32>
    %84 = tpu.matmul %83, %1, %cst_34 {dimension_numbers = #tpu.dot_dimension_numbers<[1], [0], [0], [1], [0, 0, 1, 1], [], []>} : vector<2x64xf32>, vector<64x128xf32>, vector<2x128xf32> -> vector<2x128xf32>
    %85 = arith.addf %84, %10 : vector<2x128xf32>
    %86 = arith.negf %85 : vector<2x128xf32>
    %87 = math.exp %86 : vector<2x128xf32>
    %cst_35 = arith.constant 1.000000e+00 : f32
    %88 = vector.broadcast %cst_35 : f32 to vector<2x128xf32>
    %89 = arith.addf %88, %87 : vector<2x128xf32>
    %90 = arith.divf %88, %89 : vector<2x128xf32>
    %91 = math.tanh %85 : vector<2x128xf32>
    %92 = vector.extract_strided_slice %90 {offsets = [0, 0], sizes = [2, 32], strides = [1, 1]} : vector<2x128xf32> to vector<2x32xf32>
    %93 = vector.extract_strided_slice %90 {offsets = [0, 32], sizes = [2, 32], strides = [1, 1]} : vector<2x128xf32> to vector<2x32xf32>
    %94 = vector.extract_strided_slice %91 {offsets = [0, 64], sizes = [2, 32], strides = [1, 1]} : vector<2x128xf32> to vector<2x32xf32>
    %95 = vector.extract_strided_slice %90 {offsets = [0, 96], sizes = [2, 32], strides = [1, 1]} : vector<2x128xf32> to vector<2x32xf32>
    %96 = arith.mulf %93, %55 : vector<2x32xf32>
    %97 = arith.mulf %92, %94 : vector<2x32xf32>
    %98 = arith.addf %96, %97 : vector<2x32xf32>
    %99 = math.tanh %98 : vector<2x32xf32>
    %100 = arith.mulf %95, %99 : vector<2x32xf32>
    %101 = arith.index_cast %c1_i32 : i32 to index
    %c0_36 = arith.constant 0 : index
    %c0_37 = arith.constant 0 : index
    %102 = vector.load %arg14[%101, %c0_36, %c0_37] : memref<8x2x32xf32, #tpu.memory_space<vmem>>, vector<1x2x32xf32>
    %103 = vector.shape_cast %102 : vector<1x2x32xf32> to vector<2x32xf32>
    %104 = vector.shape_cast %100 : vector<2x32xf32> to vector<1x2x32xf32>
    tpu.vector_store %arg14[%101, %c0_36, %c0_37], %104 {strides = array<i32>} : memref<8x2x32xf32, #tpu.memory_space<vmem>>, vector<1x2x32xf32>,
    %c2_i32 = arith.constant 2 : i32
    %105 = arith.index_cast %c2_i32 : i32 to index
    %c0_38 = arith.constant 0 : index
    %c0_39 = arith.constant 0 : index
    %106 = vector.load %arg0[%105, %c0_38, %c0_39] : memref<8x2x16xf32, #tpu.memory_space<vmem>>, vector<1x2x16xf32>
    %107 = vector.shape_cast %106 : vector<1x2x16xf32> to vector<2x16xf32>
    %108 = tpu.concatenate %107, %82 in 1 : vector<2x16xf32>, vector<2x32xf32> -> vector<2x48xf32>
    %cst_40 = arith.constant dense<0.000000e+00> : vector<2x128xf32>
    %109 = tpu.matmul %108, %0, %cst_40 {dimension_numbers = #tpu.dot_dimension_numbers<[1], [0], [0], [1], [0, 0, 1, 1], [], []>} : vector<2x48xf32>, vector<48x128xf32>, vector<2x128xf32> -> vector<2x128xf32>
    %110 = arith.addf %109, %7 : vector<2x128xf32>
    %111 = arith.negf %110 : vector<2x128xf32>
    %112 = math.exp %111 : vector<2x128xf32>
    %cst_41 = arith.constant 1.000000e+00 : f32
    %113 = vector.broadcast %cst_41 : f32 to vector<2x128xf32>
    %114 = arith.addf %113, %112 : vector<2x128xf32>
    %115 = arith.divf %113, %114 : vector<2x128xf32>
    %116 = math.tanh %110 : vector<2x128xf32>
    %117 = vector.extract_strided_slice %115 {offsets = [0, 0], sizes = [2, 32], strides = [1, 1]} : vector<2x128xf32> to vector<2x32xf32>
    %118 = vector.extract_strided_slice %115 {offsets = [0, 32], sizes = [2, 32], strides = [1, 1]} : vector<2x128xf32> to vector<2x32xf32>
    %119 = vector.extract_strided_slice %116 {offsets = [0, 64], sizes = [2, 32], strides = [1, 1]} : vector<2x128xf32> to vector<2x32xf32>
    %120 = vector.extract_strided_slice %115 {offsets = [0, 96], sizes = [2, 32], strides = [1, 1]} : vector<2x128xf32> to vector<2x32xf32>
    %121 = arith.mulf %118, %80 : vector<2x32xf32>
    %122 = arith.mulf %117, %119 : vector<2x32xf32>
    %123 = arith.addf %121, %122 : vector<2x32xf32>
    %124 = math.tanh %123 : vector<2x32xf32>
    %125 = arith.mulf %120, %124 : vector<2x32xf32>
    %126 = tpu.concatenate %125, %100 in 1 : vector<2x32xf32>, vector<2x32xf32> -> vector<2x64xf32>
    %cst_42 = arith.constant dense<0.000000e+00> : vector<2x128xf32>
    %127 = tpu.matmul %126, %1, %cst_42 {dimension_numbers = #tpu.dot_dimension_numbers<[1], [0], [0], [1], [0, 0, 1, 1], [], []>} : vector<2x64xf32>, vector<64x128xf32>, vector<2x128xf32> -> vector<2x128xf32>
    %128 = arith.addf %127, %10 : vector<2x128xf32>
    %129 = arith.negf %128 : vector<2x128xf32>
    %130 = math.exp %129 : vector<2x128xf32>
    %cst_43 = arith.constant 1.000000e+00 : f32
    %131 = vector.broadcast %cst_43 : f32 to vector<2x128xf32>
    %132 = arith.addf %131, %130 : vector<2x128xf32>
    %133 = arith.divf %131, %132 : vector<2x128xf32>
    %134 = math.tanh %128 : vector<2x128xf32>
    %135 = vector.extract_strided_slice %133 {offsets = [0, 0], sizes = [2, 32], strides = [1, 1]} : vector<2x128xf32> to vector<2x32xf32>
    %136 = vector.extract_strided_slice %133 {offsets = [0, 32], sizes = [2, 32], strides = [1, 1]} : vector<2x128xf32> to vector<2x32xf32>
    %137 = vector.extract_strided_slice %134 {offsets = [0, 64], sizes = [2, 32], strides = [1, 1]} : vector<2x128xf32> to vector<2x32xf32>
    %138 = vector.extract_strided_slice %133 {offsets = [0, 96], sizes = [2, 32], strides = [1, 1]} : vector<2x128xf32> to vector<2x32xf32>
    %139 = arith.mulf %136, %98 : vector<2x32xf32>
    %140 = arith.mulf %135, %137 : vector<2x32xf32>
    %141 = arith.addf %139, %140 : vector<2x32xf32>
    %142 = math.tanh %141 : vector<2x32xf32>
    %143 = arith.mulf %138, %142 : vector<2x32xf32>
    %144 = arith.index_cast %c2_i32 : i32 to index
    %c0_44 = arith.constant 0 : index
    %c0_45 = arith.constant 0 : index
    %145 = vector.load %arg14[%144, %c0_44, %c0_45] : memref<8x2x32xf32, #tpu.memory_space<vmem>>, vector<1x2x32xf32>
    %146 = vector.shape_cast %145 : vector<1x2x32xf32> to vector<2x32xf32>
    %147 = vector.shape_cast %143 : vector<2x32xf32> to vector<1x2x32xf32>
    tpu.vector_store %arg14[%144, %c0_44, %c0_45], %147 {strides = array<i32>} : memref<8x2x32xf32, #tpu.memory_space<vmem>>, vector<1x2x32xf32>,
    %c3_i32 = arith.constant 3 : i32
    %148 = arith.index_cast %c3_i32 : i32 to index
    %c0_46 = arith.constant 0 : index
    %c0_47 = arith.constant 0 : index
    %149 = vector.load %arg0[%148, %c0_46, %c0_47] : memref<8x2x16xf32, #tpu.memory_space<vmem>>, vector<1x2x16xf32>
    %150 = vector.shape_cast %149 : vector<1x2x16xf32> to vector<2x16xf32>
    %151 = tpu.concatenate %150, %125 in 1 : vector<2x16xf32>, vector<2x32xf32> -> vector<2x48xf32>
    %cst_48 = arith.constant dense<0.000000e+00> : vector<2x128xf32>
    %152 = tpu.matmul %151, %0, %cst_48 {dimension_numbers = #tpu.dot_dimension_numbers<[1], [0], [0], [1], [0, 0, 1, 1], [], []>} : vector<2x48xf32>, vector<48x128xf32>, vector<2x128xf32> -> vector<2x128xf32>
    %153 = arith.addf %152, %7 : vector<2x128xf32>
    %154 = arith.negf %153 : vector<2x128xf32>
    %155 = math.exp %154 : vector<2x128xf32>
    %cst_49 = arith.constant 1.000000e+00 : f32
    %156 = vector.broadcast %cst_49 : f32 to vector<2x128xf32>
    %157 = arith.addf %156, %155 : vector<2x128xf32>
    %158 = arith.divf %156, %157 : vector<2x128xf32>
    %159 = math.tanh %153 : vector<2x128xf32>
    %160 = vector.extract_strided_slice %158 {offsets = [0, 0], sizes = [2, 32], strides = [1, 1]} : vector<2x128xf32> to vector<2x32xf32>
    %161 = vector.extract_strided_slice %158 {offsets = [0, 32], sizes = [2, 32], strides = [1, 1]} : vector<2x128xf32> to vector<2x32xf32>
    %162 = vector.extract_strided_slice %159 {offsets = [0, 64], sizes = [2, 32], strides = [1, 1]} : vector<2x128xf32> to vector<2x32xf32>
    %163 = vector.extract_strided_slice %158 {offsets = [0, 96], sizes = [2, 32], strides = [1, 1]} : vector<2x128xf32> to vector<2x32xf32>
    %164 = arith.mulf %161, %123 : vector<2x32xf32>
    %165 = arith.mulf %160, %162 : vector<2x32xf32>
    %166 = arith.addf %164, %165 : vector<2x32xf32>
    %167 = math.tanh %166 : vector<2x32xf32>
    %168 = arith.mulf %163, %167 : vector<2x32xf32>
    %169 = tpu.concatenate %168, %143 in 1 : vector<2x32xf32>, vector<2x32xf32> -> vector<2x64xf32>
    %cst_50 = arith.constant dense<0.000000e+00> : vector<2x128xf32>
    %170 = tpu.matmul %169, %1, %cst_50 {dimension_numbers = #tpu.dot_dimension_numbers<[1], [0], [0], [1], [0, 0, 1, 1], [], []>} : vector<2x64xf32>, vector<64x128xf32>, vector<2x128xf32> -> vector<2x128xf32>
    %171 = arith.addf %170, %10 : vector<2x128xf32>
    %172 = arith.negf %171 : vector<2x128xf32>
    %173 = math.exp %172 : vector<2x128xf32>
    %cst_51 = arith.constant 1.000000e+00 : f32
    %174 = vector.broadcast %cst_51 : f32 to vector<2x128xf32>
    %175 = arith.addf %174, %173 : vector<2x128xf32>
    %176 = arith.divf %174, %175 : vector<2x128xf32>
    %177 = math.tanh %171 : vector<2x128xf32>
    %178 = vector.extract_strided_slice %176 {offsets = [0, 0], sizes = [2, 32], strides = [1, 1]} : vector<2x128xf32> to vector<2x32xf32>
    %179 = vector.extract_strided_slice %176 {offsets = [0, 32], sizes = [2, 32], strides = [1, 1]} : vector<2x128xf32> to vector<2x32xf32>
    %180 = vector.extract_strided_slice %177 {offsets = [0, 64], sizes = [2, 32], strides = [1, 1]} : vector<2x128xf32> to vector<2x32xf32>
    %181 = vector.extract_strided_slice %176 {offsets = [0, 96], sizes = [2, 32], strides = [1, 1]} : vector<2x128xf32> to vector<2x32xf32>
    %182 = arith.mulf %179, %141 : vector<2x32xf32>
    %183 = arith.mulf %178, %180 : vector<2x32xf32>
    %184 = arith.addf %182, %183 : vector<2x32xf32>
    %185 = math.tanh %184 : vector<2x32xf32>
    %186 = arith.mulf %181, %185 : vector<2x32xf32>
    %187 = arith.index_cast %c3_i32 : i32 to index
    %c0_52 = arith.constant 0 : index
    %c0_53 = arith.constant 0 : index
    %188 = vector.load %arg14[%187, %c0_52, %c0_53] : memref<8x2x32xf32, #tpu.memory_space<vmem>>, vector<1x2x32xf32>
    %189 = vector.shape_cast %188 : vector<1x2x32xf32> to vector<2x32xf32>
    %190 = vector.shape_cast %186 : vector<2x32xf32> to vector<1x2x32xf32>
    tpu.vector_store %arg14[%187, %c0_52, %c0_53], %190 {strides = array<i32>} : memref<8x2x32xf32, #tpu.memory_space<vmem>>, vector<1x2x32xf32>,
    %c4_i32 = arith.constant 4 : i32
    %191 = arith.index_cast %c4_i32 : i32 to index
    %c0_54 = arith.constant 0 : index
    %c0_55 = arith.constant 0 : index
    %192 = vector.load %arg0[%191, %c0_54, %c0_55] : memref<8x2x16xf32, #tpu.memory_space<vmem>>, vector<1x2x16xf32>
    %193 = vector.shape_cast %192 : vector<1x2x16xf32> to vector<2x16xf32>
    %194 = tpu.concatenate %193, %168 in 1 : vector<2x16xf32>, vector<2x32xf32> -> vector<2x48xf32>
    %cst_56 = arith.constant dense<0.000000e+00> : vector<2x128xf32>
    %195 = tpu.matmul %194, %0, %cst_56 {dimension_numbers = #tpu.dot_dimension_numbers<[1], [0], [0], [1], [0, 0, 1, 1], [], []>} : vector<2x48xf32>, vector<48x128xf32>, vector<2x128xf32> -> vector<2x128xf32>
    %196 = arith.addf %195, %7 : vector<2x128xf32>
    %197 = arith.negf %196 : vector<2x128xf32>
    %198 = math.exp %197 : vector<2x128xf32>
    %cst_57 = arith.constant 1.000000e+00 : f32
    %199 = vector.broadcast %cst_57 : f32 to vector<2x128xf32>
    %200 = arith.addf %199, %198 : vector<2x128xf32>
    %201 = arith.divf %199, %200 : vector<2x128xf32>
    %202 = math.tanh %196 : vector<2x128xf32>
    %203 = vector.extract_strided_slice %201 {offsets = [0, 0], sizes = [2, 32], strides = [1, 1]} : vector<2x128xf32> to vector<2x32xf32>
    %204 = vector.extract_strided_slice %201 {offsets = [0, 32], sizes = [2, 32], strides = [1, 1]} : vector<2x128xf32> to vector<2x32xf32>
    %205 = vector.extract_strided_slice %202 {offsets = [0, 64], sizes = [2, 32], strides = [1, 1]} : vector<2x128xf32> to vector<2x32xf32>
    %206 = vector.extract_strided_slice %201 {offsets = [0, 96], sizes = [2, 32], strides = [1, 1]} : vector<2x128xf32> to vector<2x32xf32>
    %207 = arith.mulf %204, %166 : vector<2x32xf32>
    %208 = arith.mulf %203, %205 : vector<2x32xf32>
    %209 = arith.addf %207, %208 : vector<2x32xf32>
    %210 = math.tanh %209 : vector<2x32xf32>
    %211 = arith.mulf %206, %210 : vector<2x32xf32>
    %212 = tpu.concatenate %211, %186 in 1 : vector<2x32xf32>, vector<2x32xf32> -> vector<2x64xf32>
    %cst_58 = arith.constant dense<0.000000e+00> : vector<2x128xf32>
    %213 = tpu.matmul %212, %1, %cst_58 {dimension_numbers = #tpu.dot_dimension_numbers<[1], [0], [0], [1], [0, 0, 1, 1], [], []>} : vector<2x64xf32>, vector<64x128xf32>, vector<2x128xf32> -> vector<2x128xf32>
    %214 = arith.addf %213, %10 : vector<2x128xf32>
    %215 = arith.negf %214 : vector<2x128xf32>
    %216 = math.exp %215 : vector<2x128xf32>
    %cst_59 = arith.constant 1.000000e+00 : f32
    %217 = vector.broadcast %cst_59 : f32 to vector<2x128xf32>
    %218 = arith.addf %217, %216 : vector<2x128xf32>
    %219 = arith.divf %217, %218 : vector<2x128xf32>
    %220 = math.tanh %214 : vector<2x128xf32>
    %221 = vector.extract_strided_slice %219 {offsets = [0, 0], sizes = [2, 32], strides = [1, 1]} : vector<2x128xf32> to vector<2x32xf32>
    %222 = vector.extract_strided_slice %219 {offsets = [0, 32], sizes = [2, 32], strides = [1, 1]} : vector<2x128xf32> to vector<2x32xf32>
    %223 = vector.extract_strided_slice %220 {offsets = [0, 64], sizes = [2, 32], strides = [1, 1]} : vector<2x128xf32> to vector<2x32xf32>
    %224 = vector.extract_strided_slice %219 {offsets = [0, 96], sizes = [2, 32], strides = [1, 1]} : vector<2x128xf32> to vector<2x32xf32>
    %225 = arith.mulf %222, %184 : vector<2x32xf32>
    %226 = arith.mulf %221, %223 : vector<2x32xf32>
    %227 = arith.addf %225, %226 : vector<2x32xf32>
    %228 = math.tanh %227 : vector<2x32xf32>
    %229 = arith.mulf %224, %228 : vector<2x32xf32>
    %230 = arith.index_cast %c4_i32 : i32 to index
    %c0_60 = arith.constant 0 : index
    %c0_61 = arith.constant 0 : index
    %231 = vector.load %arg14[%230, %c0_60, %c0_61] : memref<8x2x32xf32, #tpu.memory_space<vmem>>, vector<1x2x32xf32>
    %232 = vector.shape_cast %231 : vector<1x2x32xf32> to vector<2x32xf32>
    %233 = vector.shape_cast %229 : vector<2x32xf32> to vector<1x2x32xf32>
    tpu.vector_store %arg14[%230, %c0_60, %c0_61], %233 {strides = array<i32>} : memref<8x2x32xf32, #tpu.memory_space<vmem>>, vector<1x2x32xf32>,
    %c5_i32 = arith.constant 5 : i32
    %234 = arith.index_cast %c5_i32 : i32 to index
    %c0_62 = arith.constant 0 : index
    %c0_63 = arith.constant 0 : index
    %235 = vector.load %arg0[%234, %c0_62, %c0_63] : memref<8x2x16xf32, #tpu.memory_space<vmem>>, vector<1x2x16xf32>
    %236 = vector.shape_cast %235 : vector<1x2x16xf32> to vector<2x16xf32>
    %237 = tpu.concatenate %236, %211 in 1 : vector<2x16xf32>, vector<2x32xf32> -> vector<2x48xf32>
    %cst_64 = arith.constant dense<0.000000e+00> : vector<2x128xf32>
    %238 = tpu.matmul %237, %0, %cst_64 {dimension_numbers = #tpu.dot_dimension_numbers<[1], [0], [0], [1], [0, 0, 1, 1], [], []>} : vector<2x48xf32>, vector<48x128xf32>, vector<2x128xf32> -> vector<2x128xf32>
    %239 = arith.addf %238, %7 : vector<2x128xf32>
    %240 = arith.negf %239 : vector<2x128xf32>
    %241 = math.exp %240 : vector<2x128xf32>
    %cst_65 = arith.constant 1.000000e+00 : f32
    %242 = vector.broadcast %cst_65 : f32 to vector<2x128xf32>
    %243 = arith.addf %242, %241 : vector<2x128xf32>
    %244 = arith.divf %242, %243 : vector<2x128xf32>
    %245 = math.tanh %239 : vector<2x128xf32>
    %246 = vector.extract_strided_slice %244 {offsets = [0, 0], sizes = [2, 32], strides = [1, 1]} : vector<2x128xf32> to vector<2x32xf32>
    %247 = vector.extract_strided_slice %244 {offsets = [0, 32], sizes = [2, 32], strides = [1, 1]} : vector<2x128xf32> to vector<2x32xf32>
    %248 = vector.extract_strided_slice %245 {offsets = [0, 64], sizes = [2, 32], strides = [1, 1]} : vector<2x128xf32> to vector<2x32xf32>
    %249 = vector.extract_strided_slice %244 {offsets = [0, 96], sizes = [2, 32], strides = [1, 1]} : vector<2x128xf32> to vector<2x32xf32>
    %250 = arith.mulf %247, %209 : vector<2x32xf32>
    %251 = arith.mulf %246, %248 : vector<2x32xf32>
    %252 = arith.addf %250, %251 : vector<2x32xf32>
    %253 = math.tanh %252 : vector<2x32xf32>
    %254 = arith.mulf %249, %253 : vector<2x32xf32>
    %255 = tpu.concatenate %254, %229 in 1 : vector<2x32xf32>, vector<2x32xf32> -> vector<2x64xf32>
    %cst_66 = arith.constant dense<0.000000e+00> : vector<2x128xf32>
    %256 = tpu.matmul %255, %1, %cst_66 {dimension_numbers = #tpu.dot_dimension_numbers<[1], [0], [0], [1], [0, 0, 1, 1], [], []>} : vector<2x64xf32>, vector<64x128xf32>, vector<2x128xf32> -> vector<2x128xf32>
    %257 = arith.addf %256, %10 : vector<2x128xf32>
    %258 = arith.negf %257 : vector<2x128xf32>
    %259 = math.exp %258 : vector<2x128xf32>
    %cst_67 = arith.constant 1.000000e+00 : f32
    %260 = vector.broadcast %cst_67 : f32 to vector<2x128xf32>
    %261 = arith.addf %260, %259 : vector<2x128xf32>
    %262 = arith.divf %260, %261 : vector<2x128xf32>
    %263 = math.tanh %257 : vector<2x128xf32>
    %264 = vector.extract_strided_slice %262 {offsets = [0, 0], sizes = [2, 32], strides = [1, 1]} : vector<2x128xf32> to vector<2x32xf32>
    %265 = vector.extract_strided_slice %262 {offsets = [0, 32], sizes = [2, 32], strides = [1, 1]} : vector<2x128xf32> to vector<2x32xf32>
    %266 = vector.extract_strided_slice %263 {offsets = [0, 64], sizes = [2, 32], strides = [1, 1]} : vector<2x128xf32> to vector<2x32xf32>
    %267 = vector.extract_strided_slice %262 {offsets = [0, 96], sizes = [2, 32], strides = [1, 1]} : vector<2x128xf32> to vector<2x32xf32>
    %268 = arith.mulf %265, %227 : vector<2x32xf32>
    %269 = arith.mulf %264, %266 : vector<2x32xf32>
    %270 = arith.addf %268, %269 : vector<2x32xf32>
    %271 = math.tanh %270 : vector<2x32xf32>
    %272 = arith.mulf %267, %271 : vector<2x32xf32>
    %273 = arith.index_cast %c5_i32 : i32 to index
    %c0_68 = arith.constant 0 : index
    %c0_69 = arith.constant 0 : index
    %274 = vector.load %arg14[%273, %c0_68, %c0_69] : memref<8x2x32xf32, #tpu.memory_space<vmem>>, vector<1x2x32xf32>
    %275 = vector.shape_cast %274 : vector<1x2x32xf32> to vector<2x32xf32>
    %276 = vector.shape_cast %272 : vector<2x32xf32> to vector<1x2x32xf32>
    tpu.vector_store %arg14[%273, %c0_68, %c0_69], %276 {strides = array<i32>} : memref<8x2x32xf32, #tpu.memory_space<vmem>>, vector<1x2x32xf32>,
    %c6_i32 = arith.constant 6 : i32
    %277 = arith.index_cast %c6_i32 : i32 to index
    %c0_70 = arith.constant 0 : index
    %c0_71 = arith.constant 0 : index
    %278 = vector.load %arg0[%277, %c0_70, %c0_71] : memref<8x2x16xf32, #tpu.memory_space<vmem>>, vector<1x2x16xf32>
    %279 = vector.shape_cast %278 : vector<1x2x16xf32> to vector<2x16xf32>
    %280 = tpu.concatenate %279, %254 in 1 : vector<2x16xf32>, vector<2x32xf32> -> vector<2x48xf32>
    %cst_72 = arith.constant dense<0.000000e+00> : vector<2x128xf32>
    %281 = tpu.matmul %280, %0, %cst_72 {dimension_numbers = #tpu.dot_dimension_numbers<[1], [0], [0], [1], [0, 0, 1, 1], [], []>} : vector<2x48xf32>, vector<48x128xf32>, vector<2x128xf32> -> vector<2x128xf32>
    %282 = arith.addf %281, %7 : vector<2x128xf32>
    %283 = arith.negf %282 : vector<2x128xf32>
    %284 = math.exp %283 : vector<2x128xf32>
    %cst_73 = arith.constant 1.000000e+00 : f32
    %285 = vector.broadcast %cst_73 : f32 to vector<2x128xf32>
    %286 = arith.addf %285, %284 : vector<2x128xf32>
    %287 = arith.divf %285, %286 : vector<2x128xf32>
    %288 = math.tanh %282 : vector<2x128xf32>
    %289 = vector.extract_strided_slice %287 {offsets = [0, 0], sizes = [2, 32], strides = [1, 1]} : vector<2x128xf32> to vector<2x32xf32>
    %290 = vector.extract_strided_slice %287 {offsets = [0, 32], sizes = [2, 32], strides = [1, 1]} : vector<2x128xf32> to vector<2x32xf32>
    %291 = vector.extract_strided_slice %288 {offsets = [0, 64], sizes = [2, 32], strides = [1, 1]} : vector<2x128xf32> to vector<2x32xf32>
    %292 = vector.extract_strided_slice %287 {offsets = [0, 96], sizes = [2, 32], strides = [1, 1]} : vector<2x128xf32> to vector<2x32xf32>
    %293 = arith.mulf %290, %252 : vector<2x32xf32>
    %294 = arith.mulf %289, %291 : vector<2x32xf32>
    %295 = arith.addf %293, %294 : vector<2x32xf32>
    %296 = math.tanh %295 : vector<2x32xf32>
    %297 = arith.mulf %292, %296 : vector<2x32xf32>
    %298 = tpu.concatenate %297, %272 in 1 : vector<2x32xf32>, vector<2x32xf32> -> vector<2x64xf32>
    %cst_74 = arith.constant dense<0.000000e+00> : vector<2x128xf32>
    %299 = tpu.matmul %298, %1, %cst_74 {dimension_numbers = #tpu.dot_dimension_numbers<[1], [0], [0], [1], [0, 0, 1, 1], [], []>} : vector<2x64xf32>, vector<64x128xf32>, vector<2x128xf32> -> vector<2x128xf32>
    %300 = arith.addf %299, %10 : vector<2x128xf32>
    %301 = arith.negf %300 : vector<2x128xf32>
    %302 = math.exp %301 : vector<2x128xf32>
    %cst_75 = arith.constant 1.000000e+00 : f32
    %303 = vector.broadcast %cst_75 : f32 to vector<2x128xf32>
    %304 = arith.addf %303, %302 : vector<2x128xf32>
    %305 = arith.divf %303, %304 : vector<2x128xf32>
    %306 = math.tanh %300 : vector<2x128xf32>
    %307 = vector.extract_strided_slice %305 {offsets = [0, 0], sizes = [2, 32], strides = [1, 1]} : vector<2x128xf32> to vector<2x32xf32>
    %308 = vector.extract_strided_slice %305 {offsets = [0, 32], sizes = [2, 32], strides = [1, 1]} : vector<2x128xf32> to vector<2x32xf32>
    %309 = vector.extract_strided_slice %306 {offsets = [0, 64], sizes = [2, 32], strides = [1, 1]} : vector<2x128xf32> to vector<2x32xf32>
    %310 = vector.extract_strided_slice %305 {offsets = [0, 96], sizes = [2, 32], strides = [1, 1]} : vector<2x128xf32> to vector<2x32xf32>
    %311 = arith.mulf %308, %270 : vector<2x32xf32>
    %312 = arith.mulf %307, %309 : vector<2x32xf32>
    %313 = arith.addf %311, %312 : vector<2x32xf32>
    %314 = math.tanh %313 : vector<2x32xf32>
    %315 = arith.mulf %310, %314 : vector<2x32xf32>
    %316 = arith.index_cast %c6_i32 : i32 to index
    %c0_76 = arith.constant 0 : index
    %c0_77 = arith.constant 0 : index
    %317 = vector.load %arg14[%316, %c0_76, %c0_77] : memref<8x2x32xf32, #tpu.memory_space<vmem>>, vector<1x2x32xf32>
    %318 = vector.shape_cast %317 : vector<1x2x32xf32> to vector<2x32xf32>
    %319 = vector.shape_cast %315 : vector<2x32xf32> to vector<1x2x32xf32>
    tpu.vector_store %arg14[%316, %c0_76, %c0_77], %319 {strides = array<i32>} : memref<8x2x32xf32, #tpu.memory_space<vmem>>, vector<1x2x32xf32>,
    %c7_i32 = arith.constant 7 : i32
    %320 = arith.index_cast %c7_i32 : i32 to index
    %c0_78 = arith.constant 0 : index
    %c0_79 = arith.constant 0 : index
    %321 = vector.load %arg0[%320, %c0_78, %c0_79] : memref<8x2x16xf32, #tpu.memory_space<vmem>>, vector<1x2x16xf32>
    %322 = vector.shape_cast %321 : vector<1x2x16xf32> to vector<2x16xf32>
    %323 = tpu.concatenate %322, %297 in 1 : vector<2x16xf32>, vector<2x32xf32> -> vector<2x48xf32>
    %cst_80 = arith.constant dense<0.000000e+00> : vector<2x128xf32>
    %324 = tpu.matmul %323, %0, %cst_80 {dimension_numbers = #tpu.dot_dimension_numbers<[1], [0], [0], [1], [0, 0, 1, 1], [], []>} : vector<2x48xf32>, vector<48x128xf32>, vector<2x128xf32> -> vector<2x128xf32>
    %325 = arith.addf %324, %7 : vector<2x128xf32>
    %326 = arith.negf %325 : vector<2x128xf32>
    %327 = math.exp %326 : vector<2x128xf32>
    %cst_81 = arith.constant 1.000000e+00 : f32
    %328 = vector.broadcast %cst_81 : f32 to vector<2x128xf32>
    %329 = arith.addf %328, %327 : vector<2x128xf32>
    %330 = arith.divf %328, %329 : vector<2x128xf32>
    %331 = math.tanh %325 : vector<2x128xf32>
    %332 = vector.extract_strided_slice %330 {offsets = [0, 0], sizes = [2, 32], strides = [1, 1]} : vector<2x128xf32> to vector<2x32xf32>
    %333 = vector.extract_strided_slice %330 {offsets = [0, 32], sizes = [2, 32], strides = [1, 1]} : vector<2x128xf32> to vector<2x32xf32>
    %334 = vector.extract_strided_slice %331 {offsets = [0, 64], sizes = [2, 32], strides = [1, 1]} : vector<2x128xf32> to vector<2x32xf32>
    %335 = vector.extract_strided_slice %330 {offsets = [0, 96], sizes = [2, 32], strides = [1, 1]} : vector<2x128xf32> to vector<2x32xf32>
    %336 = arith.mulf %333, %295 : vector<2x32xf32>
    %337 = arith.mulf %332, %334 : vector<2x32xf32>
    %338 = arith.addf %336, %337 : vector<2x32xf32>
    %339 = math.tanh %338 : vector<2x32xf32>
    %340 = arith.mulf %335, %339 : vector<2x32xf32>
    %341 = tpu.concatenate %340, %315 in 1 : vector<2x32xf32>, vector<2x32xf32> -> vector<2x64xf32>
    %cst_82 = arith.constant dense<0.000000e+00> : vector<2x128xf32>
    %342 = tpu.matmul %341, %1, %cst_82 {dimension_numbers = #tpu.dot_dimension_numbers<[1], [0], [0], [1], [0, 0, 1, 1], [], []>} : vector<2x64xf32>, vector<64x128xf32>, vector<2x128xf32> -> vector<2x128xf32>
    %343 = arith.addf %342, %10 : vector<2x128xf32>
    %344 = arith.negf %343 : vector<2x128xf32>
    %345 = math.exp %344 : vector<2x128xf32>
    %cst_83 = arith.constant 1.000000e+00 : f32
    %346 = vector.broadcast %cst_83 : f32 to vector<2x128xf32>
    %347 = arith.addf %346, %345 : vector<2x128xf32>
    %348 = arith.divf %346, %347 : vector<2x128xf32>
    %349 = math.tanh %343 : vector<2x128xf32>
    %350 = vector.extract_strided_slice %348 {offsets = [0, 0], sizes = [2, 32], strides = [1, 1]} : vector<2x128xf32> to vector<2x32xf32>
    %351 = vector.extract_strided_slice %348 {offsets = [0, 32], sizes = [2, 32], strides = [1, 1]} : vector<2x128xf32> to vector<2x32xf32>
    %352 = vector.extract_strided_slice %349 {offsets = [0, 64], sizes = [2, 32], strides = [1, 1]} : vector<2x128xf32> to vector<2x32xf32>
    %353 = vector.extract_strided_slice %348 {offsets = [0, 96], sizes = [2, 32], strides = [1, 1]} : vector<2x128xf32> to vector<2x32xf32>
    %354 = arith.mulf %351, %313 : vector<2x32xf32>
    %355 = arith.mulf %350, %352 : vector<2x32xf32>
    %356 = arith.addf %354, %355 : vector<2x32xf32>
    %357 = math.tanh %356 : vector<2x32xf32>
    %358 = arith.mulf %353, %357 : vector<2x32xf32>
    %359 = arith.index_cast %c7_i32 : i32 to index
    %c0_84 = arith.constant 0 : index
    %c0_85 = arith.constant 0 : index
    %360 = vector.load %arg14[%359, %c0_84, %c0_85] : memref<8x2x32xf32, #tpu.memory_space<vmem>>, vector<1x2x32xf32>
    %361 = vector.shape_cast %360 : vector<1x2x32xf32> to vector<2x32xf32>
    %362 = vector.shape_cast %358 : vector<2x32xf32> to vector<1x2x32xf32>
    tpu.vector_store %arg14[%359, %c0_84, %c0_85], %362 {strides = array<i32>} : memref<8x2x32xf32, #tpu.memory_space<vmem>>, vector<1x2x32xf32>,
    %c8_i32 = arith.constant 8 : i32
    %c0_86 = arith.constant 0 : index
    %c0_87 = arith.constant 0 : index
    %c0_88 = arith.constant 0 : index
    %363 = vector.load %arg14[%c0_86, %c0_87, %c0_88] : memref<8x2x32xf32, #tpu.memory_space<vmem>>, vector<1x2x32xf32>
    %364 = vector.shape_cast %363 : vector<1x2x32xf32> to vector<2x32xf32>
    %c1_89 = arith.constant 1 : index
    %c0_90 = arith.constant 0 : index
    %c0_91 = arith.constant 0 : index
    %365 = vector.load %arg14[%c1_89, %c0_90, %c0_91] : memref<8x2x32xf32, #tpu.memory_space<vmem>>, vector<1x2x32xf32>
    %366 = vector.shape_cast %365 : vector<1x2x32xf32> to vector<2x32xf32>
    %c2 = arith.constant 2 : index
    %c0_92 = arith.constant 0 : index
    %c0_93 = arith.constant 0 : index
    %367 = vector.load %arg14[%c2, %c0_92, %c0_93] : memref<8x2x32xf32, #tpu.memory_space<vmem>>, vector<1x2x32xf32>
    %368 = vector.shape_cast %367 : vector<1x2x32xf32> to vector<2x32xf32>
    %c3 = arith.constant 3 : index
    %c0_94 = arith.constant 0 : index
    %c0_95 = arith.constant 0 : index
    %369 = vector.load %arg14[%c3, %c0_94, %c0_95] : memref<8x2x32xf32, #tpu.memory_space<vmem>>, vector<1x2x32xf32>
    %370 = vector.shape_cast %369 : vector<1x2x32xf32> to vector<2x32xf32>
    %c4 = arith.constant 4 : index
    %c0_96 = arith.constant 0 : index
    %c0_97 = arith.constant 0 : index
    %371 = vector.load %arg14[%c4, %c0_96, %c0_97] : memref<8x2x32xf32, #tpu.memory_space<vmem>>, vector<1x2x32xf32>
    %372 = vector.shape_cast %371 : vector<1x2x32xf32> to vector<2x32xf32>
    %c5 = arith.constant 5 : index
    %c0_98 = arith.constant 0 : index
    %c0_99 = arith.constant 0 : index
    %373 = vector.load %arg14[%c5, %c0_98, %c0_99] : memref<8x2x32xf32, #tpu.memory_space<vmem>>, vector<1x2x32xf32>
    %374 = vector.shape_cast %373 : vector<1x2x32xf32> to vector<2x32xf32>
    %c6 = arith.constant 6 : index
    %c0_100 = arith.constant 0 : index
    %c0_101 = arith.constant 0 : index
    %375 = vector.load %arg14[%c6, %c0_100, %c0_101] : memref<8x2x32xf32, #tpu.memory_space<vmem>>, vector<1x2x32xf32>
    %376 = vector.shape_cast %375 : vector<1x2x32xf32> to vector<2x32xf32>
    %c7 = arith.constant 7 : index
    %c0_102 = arith.constant 0 : index
    %c0_103 = arith.constant 0 : index
    %377 = vector.load %arg14[%c7, %c0_102, %c0_103] : memref<8x2x32xf32, #tpu.memory_space<vmem>>, vector<1x2x32xf32>
    %378 = vector.shape_cast %377 : vector<1x2x32xf32> to vector<2x32xf32>
    %379 = tpu.concatenate %364, %366, %368, %370, %372, %374, %376, %378 in 0 : vector<2x32xf32>, vector<2x32xf32>, vector<2x32xf32>, vector<2x32xf32>, vector<2x32xf32>, vector<2x32xf32>, vector<2x32xf32>, vector<2x32xf32> -> vector<16x32xf32>
    %c0_104 = arith.constant 0 : index
    %c0_105 = arith.constant 0 : index
    %380 = vector.load %arg9[%c0_104, %c0_105] : memref<32x40xf32, #tpu.memory_space<vmem>>, vector<32x40xf32>
    %cst_106 = arith.constant dense<0.000000e+00> : vector<16x40xf32>
    %381 = tpu.matmul %379, %380, %cst_106 {dimension_numbers = #tpu.dot_dimension_numbers<[1], [0], [0], [1], [0, 0, 1, 1], [], []>} : vector<16x32xf32>, vector<32x40xf32>, vector<16x40xf32> -> vector<16x40xf32>
    %c0_107 = arith.constant 0 : index
    %c0_108 = arith.constant 0 : index
    %382 = vector.load %arg10[%c0_107, %c0_108] : memref<1x40xf32, #tpu.memory_space<vmem>>, vector<1x40xf32>
    %383 = vector.broadcast %382 : vector<1x40xf32> to vector<16x40xf32>
    %384 = arith.addf %381, %383 : vector<16x40xf32>
    %c0_109 = arith.constant 0 : index
    %c0_110 = arith.constant 0 : index
    %385 = vector.load %arg11[%c0_109, %c0_110] : memref<16x40xf32, #tpu.memory_space<vmem>>, vector<16x40xf32>
    tpu.vector_store %arg11[%c0_109, %c0_110], %384 {strides = array<i32>} : memref<16x40xf32, #tpu.memory_space<vmem>>, vector<16x40xf32>,
    %c0_111 = arith.constant 0 : index
    %c0_112 = arith.constant 0 : index
    %c0_113 = arith.constant 0 : index
    %386 = vector.load %arg12[%c0_111, %c0_112, %c0_113] : memref<2x2x32xf32, #tpu.memory_space<vmem>>, vector<1x2x32xf32>
    %387 = vector.shape_cast %386 : vector<1x2x32xf32> to vector<2x32xf32>
    %388 = vector.shape_cast %340 : vector<2x32xf32> to vector<1x2x32xf32>
    tpu.vector_store %arg12[%c0_111, %c0_112, %c0_113], %388 {strides = array<i32>} : memref<2x2x32xf32, #tpu.memory_space<vmem>>, vector<1x2x32xf32>,
    %c0_114 = arith.constant 0 : index
    %c0_115 = arith.constant 0 : index
    %c0_116 = arith.constant 0 : index
    %389 = vector.load %arg13[%c0_114, %c0_115, %c0_116] : memref<2x2x32xf32, #tpu.memory_space<vmem>>, vector<1x2x32xf32>
    %390 = vector.shape_cast %389 : vector<1x2x32xf32> to vector<2x32xf32>
    %391 = vector.shape_cast %338 : vector<2x32xf32> to vector<1x2x32xf32>
    tpu.vector_store %arg13[%c0_114, %c0_115, %c0_116], %391 {strides = array<i32>} : memref<2x2x32xf32, #tpu.memory_space<vmem>>, vector<1x2x32xf32>,
    %c1_117 = arith.constant 1 : index
    %c0_118 = arith.constant 0 : index
    %c0_119 = arith.constant 0 : index
    %392 = vector.load %arg12[%c1_117, %c0_118, %c0_119] : memref<2x2x32xf32, #tpu.memory_space<vmem>>, vector<1x2x32xf32>
    %393 = vector.shape_cast %392 : vector<1x2x32xf32> to vector<2x32xf32>
    %394 = vector.shape_cast %358 : vector<2x32xf32> to vector<1x2x32xf32>
    tpu.vector_store %arg12[%c1_117, %c0_118, %c0_119], %394 {strides = array<i32>} : memref<2x2x32xf32, #tpu.memory_space<vmem>>, vector<1x2x32xf32>,
    %c1_120 = arith.constant 1 : index
    %c0_121 = arith.constant 0 : index
    %c0_122 = arith.constant 0 : index
    %395 = vector.load %arg13[%c1_120, %c0_121, %c0_122] : memref<2x2x32xf32, #tpu.memory_space<vmem>>, vector<1x2x32xf32>
    %396 = vector.shape_cast %395 : vector<1x2x32xf32> to vector<2x32xf32>
    %397 = vector.shape_cast %356 : vector<2x32xf32> to vector<1x2x32xf32>
    tpu.vector_store %arg13[%c1_120, %c0_121, %c0_122], %397 {strides = array<i32>} : memref<2x2x32xf32, #tpu.memory_space<vmem>>, vector<1x2x32xf32>,
    return
  }
}

</mosaic_0001>

<bundles_post_ra>
// kernel: generator_forward.1
= control target key start
LH: loop header
LB: loop body
LE: loop exit
PB: predicated region body
PF: predicated region fallthrough
CT: control target
= control target key end

     0   :  { %19 = vsyncpa [#allocation4], 0  ;;  %s2892_s14 = smov 16   ;;  %v2893_v3 = vmov 0.0|0.0   ;;  %vm66_vm0 = vcmask 64512   ;;  %v2894_v8 = vmov 0.0   ;;  %s3504_s0 = inlined_call_operand.vmem [shape: f32[8,2,16], index: 0, kind: input, shape index: {}]   ;;  %s3505_s1 = inlined_call_operand.vmem [shape: f32[2,8], index: 1, kind: input, shape index: {}]   ;;  %s3506_s2 = inlined_call_operand.vmem [shape: f32[2,2,32], index: 2, kind: input, shape index: {}, may-alias: {2,3}]   ;;  %s3507_s3 = inlined_call_operand.vmem [shape: f32[2,2,32], index: 3, kind: input, shape index: {}, may-alias: {2,3}]   ;;  %s3508_s4 = inlined_call_operand.vmem [shape: f32[48,128], index: 4, kind: input, shape index: {}]   ;;  %s3509_s5 = inlined_call_operand.vmem [shape: f32[1,128], index: 5, kind: input, shape index: {}]   ;;  %s3510_s6 = inlined_call_operand.vmem [shape: f32[64,128], index: 6, kind: input, shape index: {}]   ;;  %s3511_s7 = inlined_call_operand.vmem [shape: f32[1,128], index: 7, kind: input, shape index: {}]   ;;  %s3512_s8 = inlined_call_operand.vmem [shape: f32[8,128], index: 8, kind: input, shape index: {}]   ;;  %s3513_s9 = inlined_call_operand.vmem [shape: f32[32,40], index: 9, kind: input, shape index: {}]   ;;  %s3514_s10 = inlined_call_operand.vmem [shape: f32[1,40], index: 10, kind: input, shape index: {}]   ;;  %s3515_s11 = inlined_call_operand.vmem [shape: f32[16,40], index: 11, kind: output, shape index: {0}]   ;;  %s3516_s12 = inlined_call_operand.hbm [shape: f32[2,2,32], index: 12, kind: output, shape index: {1}]   ;;  %s3517_s13 = inlined_call_operand.hbm [shape: f32[2,2,32], index: 13, kind: output, shape index: {2}]  }
   0x1   :  { %v147_v0 = vld [vmem:[%s3506_s2] sm:$0x3]  ;;  %v44_v2 = vld [vmem:[%s3508_s4 + $0x8] sm:$0xff]  ;;  %2529 = vmatprep.subr.bf16.mxu1 %v2893_v3  ;;  %v45_v5 = vld [vmem:[%s3508_s4 + $0x10] sm:$0xff]  ;;  %2241 = vmatprep.subr.mxu0 %v2894_v8  ;;  %vm2895_vm1 = vmmov 0  }
   0x2   :  { %v43_v1 = vld [vmem:[%s3508_s4] sm:$0xff]  ;;  %155 = vrot.lane.b32.xlu0 %v147_v0, %s2892_s14  ;;  %v46_v6 = vld [vmem:[%s3508_s4 + $0x18] sm:$0xff]  ;;  %2243 = vmatprep.mubr.msk.f32.mxu0 %vm2895_vm1, %v2894_v8  ;;  %v48_v13 = vld [vmem:[%s3508_s4 + $0x28] sm:$0xff] }
   0x3   :  { %v2983_v4 = vpack.c.bf16 %v44_v2, %v43_v1  ;;  %v58_v7 = vld [vmem:[%s3512_s8] sm:$0xff]  ;;  %v3001_v10 = vpack.c.bf16 %v46_v6, %v45_v5 }
   0x4   :  { %v57_v9 = vld [vmem:[%s3505_s1] sm:$0x3]  ;;  %2242 = vmatpush3.msra.mxu0 %v58_v7 }
   0x5   :  { %2531 = vmatpush3.bf16.msra.mxu1 %v2983_v4  ;;  %v150_v11 = vld [vmem:[%s3507_s3] sm:$0x3]  ;;  %2244 = vmatmul.mubr.msk.f32.vlgmr.msra.gmra.mrb[0].mxu0 %vm66_vm0, %v57_v9 }
   0x6   :  { %2532 = vmatprep.subr.bf16.mxu1 %v2893_v3  ;;  %v47_v12 = vld [vmem:[%s3508_s4 + $0x20] sm:$0xff] }
   0x7   :  { %20 = vsyncpa [#allocation6], 0  ;;  %2258 = vmatprep.mubr.msk.f32.mxu1 %vm2895_vm1, %v2894_v8  ;;  %s2896_s1 = smov 32   ;;  %2538 = vmatprep.subr.bf16.mxu0 %v2893_v3  ;;  %v3020_v14 = vpack.c.bf16 %v48_v13, %v47_v12  ;;  %v153_v15 = vld [vmem:[%s3504_s0] sm:$0x3]  ;;  %vm158_vm2 = vcmask 130048  }
   0x8   :  { %242 = vrot.lane.b32.xlu1 %v150_v11, %s2896_s1  ;;  %2277 = vmatprep.mubr.msk.f32.mxu0 %vm2895_vm1, %v2894_v8  ;;  %vm160_vm3 = vcmask 392192   ;;  %v2058_v20 = vld [vmem:[%s3509_s5] ss:$0 sm:$0xff]  ;;  %s2897_s14 = smov 64   ;;  %v50_v37 = vld [vmem:[%s3510_s6 + $0x8] sm:$0xff]  ;;  %v51_v38 = vld [vmem:[%s3510_s6 + $0x10] sm:$0xff] }
   0x9   :  { %2534 = vmatpush3.bf16.msra.mxu1 %v3001_v10  ;;  %v49_v36 = vld [vmem:[%s3510_s6] sm:$0xff]  ;;  %v52_v40 = vld [vmem:[%s3510_s6 + $0x18] sm:$0xff]  ;;  %v54_v43 = vld [vmem:[%s3510_s6 + $0x28] sm:$0xff]  ;;  %vm270_vm4 = vcmask 261120   ;;  %vm272_vm5 = vcmask 523264   ;;  %vm378_vm6 = vcmask 254976  }
   0xa   :  { %2535 = vmatprep.subr.bf16.mxu1 %v2893_v3  ;;  %v3058_v39 = vpack.c.bf16 %v50_v37, %v49_v36  ;;  %v3064_v41 = vpack.c.bf16 %v52_v40, %v51_v38  ;;  %v53_v42 = vld [vmem:[%s3510_s6 + $0x20] sm:$0xff]  ;;  %v55_v47 = vld [vmem:[%s3510_s6 + $0x30] sm:$0xff]  ;;  %v56_v48 = vld [vmem:[%s3510_s6 + $0x38] sm:$0xff]  ;;  %vm1906_vm7 = vcmask 1043456   ;;  %vm1904_vm8 = vcmask 1041408   ;;  %s2901_s15 = smov [#allocation5]  }
   0xb   :  { %v3075_v45 = vpack.c.bf16 %v54_v43, %v53_v42  ;;  %v2061_v46 = vld [vmem:[%s3506_s2 + $0x2] sm:$0x3]  ;;  %v3089_v49 = vpack.c.bf16 %v56_v48, %v55_v47  ;;  %s2898_s2 = smov 48   ;;  %v3124_v58 = vld [vmem:[%s3511_s7] ss:$0 sm:$0xff]  ;;  %vm1908_vm9 = vcmask 1045504  }
   0xc   :  { %2540 = vmatpush3.bf16.msra.mxu0 %v3058_v39  ;;  %v2067_v55 = vld [vmem:[%s3504_s0 + $0x2] sm:$0x3]  ;;  %v2072_v38 = vld [vmem:[%s3504_s0 + $0x4] sm:$0x3]  ;;  %s2041_s16 = sshll.u32 %s2901_s15, 4  ;;  %s2042_s16 = int_to_ptr.vmem [resolvable:$true] %s2041_s16 }
   0xd   :  { %2537 = vmatpush3.bf16.msra.mxu1 %v3020_v14  ;;  %2541 = vmatprep.subr.bf16.mxu0 %v2893_v3  ;;  %v2062_v2 = vld [vmem:[%s3507_s3 + $0x2] sm:$0x3] }
   0xe   :  { %2550 = vmatprep.subr.bf16.mxu1 %v2893_v3 }
  0x10   :  { %2543 = vmatpush3.bf16.msra.mxu0 %v3064_v41 }
  0x11   :  { %2544 = vmatprep.subr.bf16.mxu0 %v2893_v3 }
  0x14   :  { %2546 = vmatpush3.bf16.msra.mxu0 %v3075_v45 }
  0x15   :  { %2547 = vmatprep.subr.bf16.mxu0 %v2893_v3 }
  0x18   :  { %2549 = vmatpush3.bf16.msra.mxu0 %v3089_v49 }
  0x19   :  { %2559 = vmatprep.subr.bf16.mxu0 %v2893_v3 }
  0x74   :  { %v156_v16 = vpop.permute.xlu0 %155 }
  0x75   :  { %v159_v17 = vsel %vm158_vm2, %v153_v15, %v156_v16 }
  0x76   :  { %2259 = vmatmul.mubr.msk.f32.vlgmr.msra.gmra.mrb[0].mxu1 %vm160_vm3, %v159_v17 }
  0x77   :  { %2552 = vmatpush3.bf16.msra.mxu1 %v2983_v4  ;;  %2292 = vmatprep.mubr.msk.f32.mxu1 %vm2895_vm1, %v2894_v8 }
  0x78   :  { %2553 = vmatprep.subr.bf16.mxu1 %v2893_v3 }
  0x7a   :  { %v243_v32 = vpop.permute.xlu1 %242 }
  0x7b   :  { %2555 = vmatpush3.bf16.msra.mxu1 %v3001_v10 }
  0x7c   :  { %2556 = vmatprep.subr.bf16.mxu1 %v2893_v3 }
  0x7f   :  { %2558 = vmatpush3.bf16.msra.mxu1 %v3020_v14 }
  0x80   :  { %2571 = vmatprep.subr.bf16.mxu1 %v2893_v3 }
  0xd8   :  { %v136_v18 = vpop.f32.mrb[0].mxu0 }
  0xd9   :  { %v2245_v19 = vpop.f32.mrb[1].mxu0  ;;  %v3041_v21 = vadd.f32 %v2058_v20, %v136_v18 }
 0x149   :  { %v230_v22 = vpop.f32.mrb[0].mxu1 }
 0x14a   :  { %v231_v23 = vadd.f32 %v230_v22, %v3041_v21  ;;  %v2260_v24 = vpop.f32.mrb[1].mxu1 }
 0x14c   :  { %2716 = vtanh.f32 %v231_v23  ;;  %v2064_v26 = vmul.f32 -1.442695, %v231_v23 }
 0x14e   :  { %2718 = vpow2.f32 %v2064_v26 }
 0x156   :  { %v2717_v25 = vpop.eup %2716 }
 0x157   :  { %247 = vrot.lane.b32.xlu0 %v2717_v25, %s2897_s14 }
 0x158   :  { %v2719_v27 = vpop.eup %2718 }
 0x159   :  { %v237_v28 = vadd.f32 1.0, %v2719_v27 }
 0x15b   :  { %2720 = vrcp.f32 %v237_v28 }
 0x165   :  { %v2721_v29 = vpop.eup %2720 }
 0x166   :  { %v245_v33 = vmul.f32 %v2721_v29, %v243_v32 }
 0x1c9   :  { %v248_v30 = vpop.permute.xlu0 %247 }
 0x1ca   :  { %v250_v31 = vmul.f32 %v2721_v29, %v248_v30 }
 0x1cc   :  { %252 = vrot.lane.b32.xlu1 %v250_v31, %s2896_s1 }
 0x23e   :  { %v253_v34 = vpop.permute.xlu1 %252 }
 0x23f   :  { %v3046_v35 = vadd.f32 %v253_v34, %v245_v33 }
 0x241   :  { %2722 = vtanh.f32 %v3046_v35 }
 0x24b   :  { %v2723_v44 = vpop.eup %2722 }
 0x24c   :  { %258 = vrot.lane.b32.xlu0 %v2723_v44, %s2897_s14 }
 0x250   :  { %267 = vrot.lane.b32.xlu0 %v2061_v46, %s2896_s1 }
 0x2be   :  { %v259_v50 = vpop.permute.xlu0 %258 }
 0x2bf   :  { %v261_v51 = vmul.f32 %v2721_v29, %v259_v50 }
 0x2c1   :  { %263 = vrot.lane.b32.xlu1 %v261_v51, %s2896_s1 }
 0x2c2   :  { %v268_v52 = vpop.permute.xlu0 %267 }
 0x2c5   :  { %382 = vrot.lane.b32.xlu1 %v261_v51, %s2898_s2 }
 0x333   :  { %v264_v53 = vpop.permute.xlu1 %263 }
 0x334   :  { %v271_v54 = vsel %vm270_vm4, %v264_v53, %v268_v52 }
 0x335   :  { %2278 = vmatmul.mubr.msk.f32.vlgmr.msra.gmra.mrb[2].mxu0 %vm272_vm5, %v271_v54 }
 0x336   :  { %2561 = vmatpush3.bf16.msra.mxu0 %v3058_v39  ;;  %2311 = vmatprep.mubr.msk.f32.mxu0 %vm2895_vm1, %v2894_v8 }
 0x337   :  { %v383_v56 = vpop.permute.xlu1 %382  ;;  %2562 = vmatprep.subr.bf16.mxu0 %v2893_v3 }
 0x338   :  { %v385_v57 = vsel %vm158_vm2, %v2067_v55, %v383_v56 }
 0x339   :  { %2293 = vmatmul.mubr.msk.f32.vlgmr.msra.gmra.mrb[2].mxu1 %vm160_vm3, %v385_v57 }
 0x33a   :  { %2564 = vmatpush3.bf16.msra.mxu0 %v3064_v41  ;;  %2573 = vmatpush3.bf16.msra.mxu1 %v2983_v4 }
 0x33b   :  { %2565 = vmatprep.subr.bf16.mxu0 %v2893_v3  ;;  %2574 = vmatprep.subr.bf16.mxu1 %v2893_v3 }
 0x33c   :  { %2326 = vmatprep.mubr.msk.f32.mxu1 %vm2895_vm1, %v2894_v8 }
 0x33e   :  { %2567 = vmatpush3.bf16.msra.mxu0 %v3075_v45  ;;  %2576 = vmatpush3.bf16.msra.mxu1 %v3001_v10 }
 0x33f   :  { %2568 = vmatprep.subr.bf16.mxu0 %v2893_v3  ;;  %2577 = vmatprep.subr.bf16.mxu1 %v2893_v3 }
 0x342   :  { %2570 = vmatpush3.bf16.msra.mxu0 %v3089_v49  ;;  %2579 = vmatpush3.bf16.msra.mxu1 %v3020_v14 }
 0x343   :  { %2580 = vmatprep.subr.bf16.mxu0 %v2893_v3  ;;  %2592 = vmatprep.subr.bf16.mxu1 %v2893_v3 }
 0x408   :  { %v342_v59 = vpop.f32.mrb[2].mxu0 }
 0x409   :  { %v343_v60 = vadd.f32 %v3124_v58, %v342_v59  ;;  %v2279_v61 = vpop.f32.mrb[3].mxu0 }
 0x40b   :  { %2724 = vtanh.f32 %v343_v60  ;;  %v2066_v6 = vmul.f32 -1.442695, %v343_v60 }
 0x40c   :  { %v455_v62 = vpop.f32.mrb[2].mxu1 }
 0x40d   :  { %v456_v63 = vadd.f32 %v455_v62, %v3041_v21  ;;  %v2294_v0 = vpop.f32.mrb[3].mxu1 }
 0x40f   :  { %2726 = vtanh.f32 %v456_v63  ;;  %v2069_v7 = vmul.f32 -1.442695, %v456_v63 }
 0x410   :  { %2728 = vpow2.f32 %v2066_v6 }
 0x411   :  { %2730 = vpow2.f32 %v2069_v7 }
 0x415   :  { %v2725_v1 = vpop.eup %2724 }
 0x416   :  { %359 = vrot.lane.b32.xlu0 %v2725_v1, %s2897_s14 }
 0x419   :  { %v2727_v5 = vpop.eup %2726 }
 0x41a   :  { %354 = vrot.lane.b32.xlu0 %v2062_v2, %s2896_s1  ;;  %468 = vrot.lane.b32.xlu1 %v2727_v5, %s2897_s14  ;;  %v2729_v9 = vpop.eup %2728 }
 0x41b   :  { %v349_v11 = vadd.f32 1.0, %v2729_v9  ;;  %v2731_v12 = vpop.eup %2730 }
 0x41c   :  { %v462_v13 = vadd.f32 1.0, %v2731_v12 }
 0x41d   :  { %2732 = vrcp.f32 %v349_v11 }
 0x41e   :  { %2734 = vrcp.f32 %v462_v13 }
 0x427   :  { %v2733_v15 = vpop.eup %2732 }
 0x428   :  { %v2735_v18 = vpop.eup %2734 }
 0x429   :  { %v466_v26 = vmul.f32 %v2735_v18, %v3046_v35 }
 0x488   :  { %v360_v16 = vpop.permute.xlu0 %359 }
 0x489   :  { %v362_v17 = vmul.f32 %v2733_v15, %v360_v16 }
 0x48b   :  { %364 = vrot.lane.b32.xlu1 %v362_v17, %s2896_s1 }
 0x48c   :  { %v469_v19 = vpop.permute.xlu1 %468  ;;  %v355_v22 = vpop.permute.xlu0 %354 }
 0x48d   :  { %v471_v20 = vmul.f32 %v2735_v18, %v469_v19  ;;  %v357_v23 = vmul.f32 %v2733_v15, %v355_v22 }
 0x48f   :  { %473 = vrot.lane.b32.xlu0 %v471_v20, %s2896_s1 }
 0x4fd   :  { %v365_v24 = vpop.permute.xlu1 %364 }
 0x4fe   :  { %v3136_v25 = vadd.f32 %v365_v24, %v357_v23  ;;  %v2077_v23 = vld [vmem:[%s3504_s0 + $0x6] sm:$0x3] }
 0x500   :  { %2736 = vtanh.f32 %v3136_v25 }
 0x501   :  { %v474_v27 = vpop.permute.xlu0 %473 }
 0x502   :  { %v3140_v28 = vadd.f32 %v474_v27, %v466_v26 }
 0x504   :  { %2738 = vtanh.f32 %v3140_v28 }
 0x50a   :  { %v2737_v29 = vpop.eup %2736 }
 0x50b   :  { %370 = vrot.lane.b32.xlu1 %v2737_v29, %s2897_s14 }
 0x50e   :  { %v2739_v30 = vpop.eup %2738 }
 0x50f   :  { %479 = vrot.lane.b32.xlu0 %v2739_v30, %s2897_s14 }
 0x57d   :  { %v371_v31 = vpop.permute.xlu1 %370 }
 0x57e   :  { %v3145_v32 = vmul.f32 %v2733_v15, %v371_v31 }
 0x580   :  { %487 = vrot.lane.b32.xlu0 %v3145_v32, %s2897_s14 }
 0x581   :  { %v480_v33 = vpop.permute.xlu0 %479 }
 0x582   :  { %v482_v34 = vmul.f32 %v2735_v18, %v480_v33 }
 0x584   :  { %484 = vrot.lane.b32.xlu1 %v482_v34, %s2896_s1 }
 0x588   :  { %596 = vrot.lane.b32.xlu1 %v482_v34, %s2898_s2 }
 0x5f2   :  { %v488_v35 = vpop.permute.xlu0 %487 }
 0x5f6   :  { %v485_v36 = vpop.permute.xlu1 %484 }
 0x5f7   :  { %v490_v37 = vsel %vm270_vm4, %v485_v36, %v488_v35 }
 0x5f8   :  { %2312 = vmatmul.mubr.msk.f32.vlgmr.msra.gmra.mrb[4].mxu0 %vm272_vm5, %v490_v37 }
 0x5f9   :  { %2582 = vmatpush3.bf16.msra.mxu0 %v3058_v39  ;;  %2345 = vmatprep.mubr.msk.f32.mxu0 %vm2895_vm1, %v2894_v8 }
 0x5fa   :  { %v597_v40 = vpop.permute.xlu1 %596  ;;  %2583 = vmatprep.subr.bf16.mxu0 %v2893_v3 }
 0x5fb   :  { %v599_v42 = vsel %vm158_vm2, %v2072_v38, %v597_v40 }
 0x5fc   :  { %2327 = vmatmul.mubr.msk.f32.vlgmr.msra.gmra.mrb[4].mxu1 %vm160_vm3, %v599_v42 }
 0x5fd   :  { %2585 = vmatpush3.bf16.msra.mxu0 %v3064_v41  ;;  %2594 = vmatpush3.bf16.msra.mxu1 %v2983_v4 }
 0x5fe   :  { %2586 = vmatprep.subr.bf16.mxu0 %v2893_v3  ;;  %2595 = vmatprep.subr.bf16.mxu1 %v2893_v3 }
 0x5ff   :  { %2360 = vmatprep.mubr.msk.f32.mxu1 %vm2895_vm1, %v2894_v8 }
 0x601   :  { %2588 = vmatpush3.bf16.msra.mxu0 %v3075_v45  ;;  %2597 = vmatpush3.bf16.msra.mxu1 %v3001_v10 }
 0x602   :  { %2589 = vmatprep.subr.bf16.mxu0 %v2893_v3  ;;  %2598 = vmatprep.subr.bf16.mxu1 %v2893_v3 }
 0x605   :  { %2591 = vmatpush3.bf16.msra.mxu0 %v3089_v49  ;;  %2600 = vmatpush3.bf16.msra.mxu1 %v3020_v14 }
 0x606   :  { %2601 = vmatprep.subr.bf16.mxu1 %v2893_v3  ;;  %2613 = vmatprep.subr.bf16.mxu0 %v2893_v3 }
 0x6cb   :  { %v560_v43 = vpop.f32.mrb[4].mxu0 }
 0x6cc   :  { %v561_v44 = vadd.f32 %v3124_v58, %v560_v43  ;;  %v2313_v46 = vpop.f32.mrb[5].mxu0 }
 0x6ce   :  { %2740 = vtanh.f32 %v561_v44  ;;  %v2071_v53 = vmul.f32 -1.442695, %v561_v44 }
 0x6cf   :  { %v669_v47 = vpop.f32.mrb[4].mxu1 }
 0x6d0   :  { %v670_v48 = vadd.f32 %v669_v47, %v3041_v21  ;;  %v2328_v50 = vpop.f32.mrb[5].mxu1 }
 0x6d2   :  { %2742 = vtanh.f32 %v670_v48  ;;  %v2074_v54 = vmul.f32 -1.442695, %v670_v48 }
 0x6d3   :  { %2744 = vpow2.f32 %v2071_v53 }
 0x6d4   :  { %2746 = vpow2.f32 %v2074_v54 }
 0x6d8   :  { %v2741_v51 = vpop.eup %2740 }
 0x6d9   :  { %573 = vrot.lane.b32.xlu0 %v2741_v51, %s2897_s14 }
 0x6dc   :  { %v2743_v52 = vpop.eup %2742 }
 0x6dd   :  { %682 = vrot.lane.b32.xlu1 %v2743_v52, %s2897_s14  ;;  %v2745_v55 = vpop.eup %2744 }
 0x6de   :  { %v567_v56 = vadd.f32 1.0, %v2745_v55  ;;  %v2747_v57 = vpop.eup %2746 }
 0x6df   :  { %v676_v59 = vadd.f32 1.0, %v2747_v57 }
 0x6e0   :  { %2748 = vrcp.f32 %v567_v56 }
 0x6e1   :  { %2750 = vrcp.f32 %v676_v59 }
 0x6ea   :  { %v2749_v60 = vpop.eup %2748 }
 0x6eb   :  { %v2751_v63 = vpop.eup %2750  ;;  %v571_v2 = vmul.f32 %v2749_v60, %v3136_v25 }
 0x6ec   :  { %v680_v7 = vmul.f32 %v2751_v63, %v3140_v28 }
 0x74b   :  { %v574_v61 = vpop.permute.xlu0 %573 }
 0x74c   :  { %v576_v62 = vmul.f32 %v2749_v60, %v574_v61 }
 0x74e   :  { %578 = vrot.lane.b32.xlu0 %v576_v62, %s2896_s1 }
 0x74f   :  { %v683_v0 = vpop.permute.xlu1 %682 }
 0x750   :  { %v685_v1 = vmul.f32 %v2751_v63, %v683_v0 }
 0x752   :  { %687 = vrot.lane.b32.xlu1 %v685_v1, %s2896_s1 }
 0x7c0   :  { %v579_v5 = vpop.permute.xlu0 %578 }
 0x7c1   :  { %v3183_v6 = vadd.f32 %v579_v5, %v571_v2  ;;  %v2082_v5 = vld [vmem:[%s3504_s0 + $0x8] sm:$0x3] }
 0x7c3   :  { %2752 = vtanh.f32 %v3183_v6 }
 0x7c4   :  { %v688_v9 = vpop.permute.xlu1 %687 }
 0x7c5   :  { %v3187_v11 = vadd.f32 %v688_v9, %v680_v7 }
 0x7c7   :  { %2754 = vtanh.f32 %v3187_v11 }
 0x7cd   :  { %v2753_v12 = vpop.eup %2752 }
 0x7ce   :  { %584 = vrot.lane.b32.xlu0 %v2753_v12, %s2897_s14 }
 0x7d1   :  { %v2755_v13 = vpop.eup %2754 }
 0x7d2   :  { %693 = vrot.lane.b32.xlu1 %v2755_v13, %s2897_s14 }
 0x840   :  { %v585_v15 = vpop.permute.xlu0 %584 }
 0x841   :  { %v3192_v16 = vmul.f32 %v2749_v60, %v585_v15 }
 0x843   :  { %701 = vrot.lane.b32.xlu1 %v3192_v16, %s2897_s14 }
 0x844   :  { %v694_v17 = vpop.permute.xlu1 %693 }
 0x845   :  { %v696_v18 = vmul.f32 %v2751_v63, %v694_v17 }
 0x847   :  { %698 = vrot.lane.b32.xlu0 %v696_v18, %s2896_s1 }
 0x84b   :  { %810 = vrot.lane.b32.xlu0 %v696_v18, %s2898_s2 }
 0x8b5   :  { %v702_v19 = vpop.permute.xlu1 %701 }
 0x8b9   :  { %v699_v20 = vpop.permute.xlu0 %698 }
 0x8ba   :  { %v704_v22 = vsel %vm270_vm4, %v699_v20, %v702_v19 }
 0x8bb   :  { %2346 = vmatmul.mubr.msk.f32.vlgmr.msra.gmra.mrb[6].mxu0 %vm272_vm5, %v704_v22 }
 0x8bc   :  { %2615 = vmatpush3.bf16.msra.mxu0 %v2983_v4  ;;  %2394 = vmatprep.mubr.msk.f32.mxu0 %vm2895_vm1, %v2894_v8 }
 0x8bd   :  { %v811_v24 = vpop.permute.xlu0 %810  ;;  %2616 = vmatprep.subr.bf16.mxu0 %v2893_v3 }
 0x8be   :  { %v813_v25 = vsel %vm158_vm2, %v2077_v23, %v811_v24 }
 0x8bf   :  { %2361 = vmatmul.mubr.msk.f32.vlgmr.msra.gmra.mrb[6].mxu1 %vm160_vm3, %v813_v25 }
 0x8c0   :  { %2603 = vmatpush3.bf16.msra.mxu1 %v3058_v39  ;;  %2618 = vmatpush3.bf16.msra.mxu0 %v3001_v10 }
 0x8c1   :  { %2604 = vmatprep.subr.bf16.mxu1 %v2893_v3  ;;  %2379 = vmatprep.mubr.msk.f32.mxu1 %vm2895_vm1, %v2894_v8 }
 0x8c2   :  { %2619 = vmatprep.subr.bf16.mxu0 %v2893_v3 }
 0x8c4   :  { %2606 = vmatpush3.bf16.msra.mxu1 %v3064_v41  ;;  %2621 = vmatpush3.bf16.msra.mxu0 %v3020_v14 }
 0x8c5   :  { %2607 = vmatprep.subr.bf16.mxu1 %v2893_v3  ;;  %2622 = vmatprep.subr.bf16.mxu0 %v2893_v3 }
 0x8c8   :  { %2609 = vmatpush3.bf16.msra.mxu1 %v3075_v45 }
 0x8c9   :  { %2610 = vmatprep.subr.bf16.mxu1 %v2893_v3 }
 0x8cc   :  { %2612 = vmatpush3.bf16.msra.mxu1 %v3089_v49 }
 0x8cd   :  { %2634 = vmatprep.subr.bf16.mxu1 %v2893_v3 }
 0x98e   :  { %v774_v26 = vpop.f32.mrb[6].mxu0 }
 0x98f   :  { %v775_v27 = vadd.f32 %v3124_v58, %v774_v26  ;;  %v2347_v28 = vpop.f32.mrb[7].mxu0 }
 0x991   :  { %2756 = vtanh.f32 %v775_v27  ;;  %v2076_v35 = vmul.f32 -1.442695, %v775_v27 }
 0x992   :  { %v883_v29 = vpop.f32.mrb[6].mxu1 }
 0x993   :  { %v884_v30 = vadd.f32 %v883_v29, %v3041_v21  ;;  %v2362_v31 = vpop.f32.mrb[7].mxu1 }
 0x995   :  { %2758 = vtanh.f32 %v884_v30  ;;  %v2079_v36 = vmul.f32 -1.442695, %v884_v30 }
 0x996   :  { %2760 = vpow2.f32 %v2076_v35 }
 0x997   :  { %2762 = vpow2.f32 %v2079_v36 }
 0x99b   :  { %v2757_v33 = vpop.eup %2756 }
 0x99c   :  { %787 = vrot.lane.b32.xlu1 %v2757_v33, %s2897_s14 }
 0x99f   :  { %v2759_v34 = vpop.eup %2758 }
 0x9a0   :  { %896 = vrot.lane.b32.xlu0 %v2759_v34, %s2897_s14  ;;  %v2761_v37 = vpop.eup %2760 }
 0x9a1   :  { %v781_v38 = vadd.f32 1.0, %v2761_v37  ;;  %v2763_v40 = vpop.eup %2762 }
 0x9a2   :  { %v890_v42 = vadd.f32 1.0, %v2763_v40 }
 0x9a3   :  { %2764 = vrcp.f32 %v781_v38 }
 0x9a4   :  { %2766 = vrcp.f32 %v890_v42 }
 0x9ad   :  { %v2765_v43 = vpop.eup %2764 }
 0x9ae   :  { %v2767_v47 = vpop.eup %2766  ;;  %v785_v51 = vmul.f32 %v2765_v43, %v3183_v6 }
 0x9af   :  { %v894_v54 = vmul.f32 %v2767_v47, %v3187_v11 }
 0xa0e   :  { %v788_v44 = vpop.permute.xlu1 %787 }
 0xa0f   :  { %v790_v46 = vmul.f32 %v2765_v43, %v788_v44 }
 0xa11   :  { %792 = vrot.lane.b32.xlu1 %v790_v46, %s2896_s1 }
 0xa12   :  { %v897_v48 = vpop.permute.xlu0 %896 }
 0xa13   :  { %v899_v50 = vmul.f32 %v2767_v47, %v897_v48 }
 0xa15   :  { %901 = vrot.lane.b32.xlu0 %v899_v50, %s2896_s1 }
 0xa83   :  { %v793_v52 = vpop.permute.xlu1 %792 }
 0xa84   :  { %v3230_v53 = vadd.f32 %v793_v52, %v785_v51 }
 0xa86   :  { %2768 = vtanh.f32 %v3230_v53 }
 0xa87   :  { %v902_v55 = vpop.permute.xlu0 %901 }
 0xa88   :  { %v3234_v56 = vadd.f32 %v902_v55, %v894_v54 }
 0xa8a   :  { %2770 = vtanh.f32 %v3234_v56 }
 0xa90   :  { %v2769_v57 = vpop.eup %2768 }
 0xa91   :  { %798 = vrot.lane.b32.xlu1 %v2769_v57, %s2897_s14 }
 0xa94   :  { %v2771_v59 = vpop.eup %2770 }
 0xa95   :  { %907 = vrot.lane.b32.xlu0 %v2771_v59, %s2897_s14 }
 0xb03   :  { %v799_v60 = vpop.permute.xlu1 %798 }
 0xb04   :  { %v3239_v61 = vmul.f32 %v2765_v43, %v799_v60 }
 0xb06   :  { %915 = vrot.lane.b32.xlu0 %v3239_v61, %s2897_s14 }
 0xb07   :  { %v908_v62 = vpop.permute.xlu0 %907 }
 0xb08   :  { %v910_v63 = vmul.f32 %v2767_v47, %v908_v62 }
 0xb0a   :  { %912 = vrot.lane.b32.xlu1 %v910_v63, %s2896_s1 }
 0xb0e   :  { %1024 = vrot.lane.b32.xlu1 %v910_v63, %s2898_s2 }
 0xb78   :  { %v916_v0 = vpop.permute.xlu0 %915 }
 0xb7c   :  { %v913_v1 = vpop.permute.xlu1 %912 }
 0xb7d   :  { %v918_v2 = vsel %vm270_vm4, %v913_v1, %v916_v0 }
 0xb7e   :  { %2380 = vmatmul.mubr.msk.f32.vlgmr.msra.gmra.mrb[8].mxu1 %vm272_vm5, %v918_v2 }
 0xb7f   :  { %2636 = vmatpush3.bf16.msra.mxu1 %v2983_v4  ;;  %2428 = vmatprep.mubr.msk.f32.mxu1 %vm2895_vm1, %v2894_v8 }
 0xb80   :  { %v1025_v6 = vpop.permute.xlu1 %1024  ;;  %2637 = vmatprep.subr.bf16.mxu1 %v2893_v3 }
 0xb81   :  { %v1027_v7 = vsel %vm158_vm2, %v2082_v5, %v1025_v6 }
 0xb82   :  { %2395 = vmatmul.mubr.msk.f32.vlgmr.msra.gmra.mrb[8].mxu0 %vm160_vm3, %v1027_v7 }
 0xb83   :  { %2624 = vmatpush3.bf16.msra.mxu0 %v3058_v39  ;;  %2639 = vmatpush3.bf16.msra.mxu1 %v3001_v10 }
 0xb84   :  { %2625 = vmatprep.subr.bf16.mxu0 %v2893_v3  ;;  %2413 = vmatprep.mubr.msk.f32.mxu0 %vm2895_vm1, %v2894_v8 }
 0xb85   :  { %2640 = vmatprep.subr.bf16.mxu1 %v2893_v3 }
 0xb87   :  { %2627 = vmatpush3.bf16.msra.mxu0 %v3064_v41  ;;  %2642 = vmatpush3.bf16.msra.mxu1 %v3020_v14 }
 0xb88   :  { %2628 = vmatprep.subr.bf16.mxu0 %v2893_v3  ;;  %2643 = vmatprep.subr.bf16.mxu1 %v2893_v3 }
 0xb8b   :  { %2630 = vmatpush3.bf16.msra.mxu0 %v3075_v45 }
 0xb8c   :  { %2631 = vmatprep.subr.bf16.mxu0 %v2893_v3 }
 0xb8f   :  { %2633 = vmatpush3.bf16.msra.mxu0 %v3089_v49 }
 0xb90   :  { %2655 = vmatprep.subr.bf16.mxu0 %v2893_v3 }
 0xc51   :  { %v988_v9 = vpop.f32.mrb[8].mxu1 }
 0xc52   :  { %v989_v11 = vadd.f32 %v3124_v58, %v988_v9  ;;  %v2381_v12 = vpop.f32.mrb[9].mxu1 }
 0xc54   :  { %2772 = vtanh.f32 %v989_v11  ;;  %v2081_v20 = vmul.f32 -1.442695, %v989_v11 }
 0xc55   :  { %v1097_v13 = vpop.f32.mrb[8].mxu0 }
 0xc56   :  { %v1098_v15 = vadd.f32 %v1097_v13, %v3041_v21  ;;  %v2396_v17 = vpop.f32.mrb[9].mxu0 }
 0xc58   :  { %2774 = vtanh.f32 %v1098_v15  ;;  %v2084_v22 = vmul.f32 -1.442695, %v1098_v15 }
 0xc59   :  { %2776 = vpow2.f32 %v2081_v20 }
 0xc5a   :  { %2778 = vpow2.f32 %v2084_v22 }
 0xc5e   :  { %v2773_v18 = vpop.eup %2772 }
 0xc5f   :  { %1001 = vrot.lane.b32.xlu0 %v2773_v18, %s2897_s14 }
 0xc62   :  { %v2775_v19 = vpop.eup %2774 }
 0xc63   :  { %1110 = vrot.lane.b32.xlu1 %v2775_v19, %s2897_s14  ;;  %v2777_v23 = vpop.eup %2776 }
 0xc64   :  { %v995_v24 = vadd.f32 1.0, %v2777_v23  ;;  %v2779_v25 = vpop.eup %2778 }
 0xc65   :  { %v1104_v26 = vadd.f32 1.0, %v2779_v25 }
 0xc66   :  { %2780 = vrcp.f32 %v995_v24 }
 0xc67   :  { %2782 = vrcp.f32 %v1104_v26 }
 0xc70   :  { %v2781_v27 = vpop.eup %2780 }
 0xc71   :  { %v2783_v30 = vpop.eup %2782  ;;  %v999_v34 = vmul.f32 %v2781_v27, %v3230_v53  ;;  %v2087_v53 = vld [vmem:[%s3504_s0 + $0xa] sm:$0x3] }
 0xc72   :  { %v1108_v37 = vmul.f32 %v2783_v30, %v3234_v56 }
 0xcd1   :  { %v1002_v28 = vpop.permute.xlu0 %1001 }
 0xcd2   :  { %v1004_v29 = vmul.f32 %v2781_v27, %v1002_v28 }
 0xcd4   :  { %1006 = vrot.lane.b32.xlu0 %v1004_v29, %s2896_s1 }
 0xcd5   :  { %v1111_v31 = vpop.permute.xlu1 %1110 }
 0xcd6   :  { %v1113_v33 = vmul.f32 %v2783_v30, %v1111_v31 }
 0xcd8   :  { %1115 = vrot.lane.b32.xlu1 %v1113_v33, %s2896_s1 }
 0xd46   :  { %v1007_v35 = vpop.permute.xlu0 %1006 }
 0xd47   :  { %v3277_v36 = vadd.f32 %v1007_v35, %v999_v34 }
 0xd49   :  { %2784 = vtanh.f32 %v3277_v36 }
 0xd4a   :  { %v1116_v38 = vpop.permute.xlu1 %1115 }
 0xd4b   :  { %v3281_v40 = vadd.f32 %v1116_v38, %v1108_v37  ;;  %v2092_v37 = vld [vmem:[%s3504_s0 + $0xc] sm:$0x3] }
 0xd4d   :  { %2786 = vtanh.f32 %v3281_v40 }
 0xd53   :  { %v2785_v42 = vpop.eup %2784 }
 0xd54   :  { %1012 = vrot.lane.b32.xlu0 %v2785_v42, %s2897_s14 }
 0xd57   :  { %v2787_v43 = vpop.eup %2786 }
 0xd58   :  { %1121 = vrot.lane.b32.xlu1 %v2787_v43, %s2897_s14 }
 0xdc6   :  { %v1013_v44 = vpop.permute.xlu0 %1012 }
 0xdc7   :  { %v3286_v46 = vmul.f32 %v2781_v27, %v1013_v44 }
 0xdc9   :  { %1129 = vrot.lane.b32.xlu1 %v3286_v46, %s2897_s14 }
 0xdca   :  { %v1122_v47 = vpop.permute.xlu1 %1121 }
 0xdcb   :  { %v1124_v48 = vmul.f32 %v2783_v30, %v1122_v47 }
 0xdcd   :  { %1126 = vrot.lane.b32.xlu0 %v1124_v48, %s2896_s1 }
 0xdd1   :  { %1238 = vrot.lane.b32.xlu0 %v1124_v48, %s2898_s2 }
 0xe3b   :  { %v1130_v50 = vpop.permute.xlu1 %1129 }
 0xe3f   :  { %v1127_v51 = vpop.permute.xlu0 %1126 }
 0xe40   :  { %v1132_v52 = vsel %vm270_vm4, %v1127_v51, %v1130_v50 }
 0xe41   :  { %2414 = vmatmul.mubr.msk.f32.vlgmr.msra.gmra.mrb[10].mxu0 %vm272_vm5, %v1132_v52 }
 0xe42   :  { %2657 = vmatpush3.bf16.msra.mxu0 %v2983_v4  ;;  %2462 = vmatprep.mubr.msk.f32.mxu0 %vm2895_vm1, %v2894_v8 }
 0xe43   :  { %v1239_v54 = vpop.permute.xlu0 %1238  ;;  %2658 = vmatprep.subr.bf16.mxu0 %v2893_v3 }
 0xe44   :  { %v1241_v55 = vsel %vm158_vm2, %v2087_v53, %v1239_v54 }
 0xe45   :  { %2429 = vmatmul.mubr.msk.f32.vlgmr.msra.gmra.mrb[10].mxu1 %vm160_vm3, %v1241_v55 }
 0xe46   :  { %2645 = vmatpush3.bf16.msra.mxu1 %v3058_v39  ;;  %2660 = vmatpush3.bf16.msra.mxu0 %v3001_v10 }
 0xe47   :  { %2646 = vmatprep.subr.bf16.mxu1 %v2893_v3  ;;  %2447 = vmatprep.mubr.msk.f32.mxu1 %vm2895_vm1, %v2894_v8 }
 0xe48   :  { %2661 = vmatprep.subr.bf16.mxu0 %v2893_v3 }
 0xe4a   :  { %2648 = vmatpush3.bf16.msra.mxu1 %v3064_v41  ;;  %2663 = vmatpush3.bf16.msra.mxu0 %v3020_v14 }
 0xe4b   :  { %2649 = vmatprep.subr.bf16.mxu1 %v2893_v3  ;;  %2664 = vmatprep.subr.bf16.mxu0 %v2893_v3 }
 0xe4e   :  { %2651 = vmatpush3.bf16.msra.mxu1 %v3075_v45 }
 0xe4f   :  { %2652 = vmatprep.subr.bf16.mxu1 %v2893_v3 }
 0xe52   :  { %2654 = vmatpush3.bf16.msra.mxu1 %v3089_v49 }
 0xe53   :  { %2676 = vmatprep.subr.bf16.mxu1 %v2893_v3 }
 0xf14   :  { %v1202_v56 = vpop.f32.mrb[10].mxu0 }
 0xf15   :  { %v1203_v57 = vadd.f32 %v3124_v58, %v1202_v56  ;;  %v2415_v59 = vpop.f32.mrb[11].mxu0 }
 0xf17   :  { %2788 = vtanh.f32 %v1203_v57  ;;  %v2086_v2 = vmul.f32 -1.442695, %v1203_v57 }
 0xf18   :  { %v1311_v60 = vpop.f32.mrb[10].mxu1 }
 0xf19   :  { %v1312_v62 = vadd.f32 %v1311_v60, %v3041_v21  ;;  %v2430_v63 = vpop.f32.mrb[11].mxu1 }
 0xf1b   :  { %2790 = vtanh.f32 %v1312_v62  ;;  %v2089_v5 = vmul.f32 -1.442695, %v1312_v62 }
 0xf1c   :  { %2792 = vpow2.f32 %v2086_v2 }
 0xf1d   :  { %2794 = vpow2.f32 %v2089_v5 }
 0xf21   :  { %v2789_v0 = vpop.eup %2788 }
 0xf22   :  { %1215 = vrot.lane.b32.xlu1 %v2789_v0, %s2897_s14 }
 0xf25   :  { %v2791_v1 = vpop.eup %2790 }
 0xf26   :  { %1324 = vrot.lane.b32.xlu0 %v2791_v1, %s2897_s14  ;;  %v2793_v6 = vpop.eup %2792 }
 0xf27   :  { %v1209_v7 = vadd.f32 1.0, %v2793_v6  ;;  %v2795_v9 = vpop.eup %2794 }
 0xf28   :  { %v1318_v11 = vadd.f32 1.0, %v2795_v9 }
 0xf29   :  { %2796 = vrcp.f32 %v1209_v7 }
 0xf2a   :  { %2798 = vrcp.f32 %v1318_v11 }
 0xf33   :  { %v2797_v12 = vpop.eup %2796 }
 0xf34   :  { %v2799_v17 = vpop.eup %2798  ;;  %v1213_v20 = vmul.f32 %v2797_v12, %v3277_v36 }
 0xf35   :  { %v1322_v24 = vmul.f32 %v2799_v17, %v3281_v40 }
 0xf94   :  { %v1216_v13 = vpop.permute.xlu1 %1215 }
 0xf95   :  { %v1218_v15 = vmul.f32 %v2797_v12, %v1216_v13 }
 0xf97   :  { %1220 = vrot.lane.b32.xlu1 %v1218_v15, %s2896_s1 }
 0xf98   :  { %v1325_v18 = vpop.permute.xlu0 %1324 }
 0xf99   :  { %v1327_v19 = vmul.f32 %v2799_v17, %v1325_v18 }
 0xf9b   :  { %1329 = vrot.lane.b32.xlu0 %v1327_v19, %s2896_s1 }
0x1009   :  { %v1221_v22 = vpop.permute.xlu1 %1220 }
0x100a   :  { %v3324_v23 = vadd.f32 %v1221_v22, %v1213_v20  ;;  %v2097_v22 = vld [vmem:[%s3504_s0 + $0xe] sm:$0x3]  ;;  %s2899_s0 = smov 96  }
0x100c   :  { %2800 = vtanh.f32 %v3324_v23 }
0x100d   :  { %v1330_v25 = vpop.permute.xlu0 %1329 }
0x100e   :  { %v3328_v26 = vadd.f32 %v1330_v25, %v1322_v24 }
0x1010   :  { %2802 = vtanh.f32 %v3328_v26 }
0x1016   :  { %v2801_v27 = vpop.eup %2800 }
0x1017   :  { %1226 = vrot.lane.b32.xlu1 %v2801_v27, %s2897_s14 }
0x101a   :  { %v2803_v28 = vpop.eup %2802 }
0x101b   :  { %1335 = vrot.lane.b32.xlu0 %v2803_v28, %s2897_s14 }
0x1089   :  { %v1227_v29 = vpop.permute.xlu1 %1226 }
0x108a   :  { %v3333_v30 = vmul.f32 %v2797_v12, %v1227_v29 }
0x108c   :  { %1343 = vrot.lane.b32.xlu0 %v3333_v30, %s2897_s14 }
0x108d   :  { %v1336_v31 = vpop.permute.xlu0 %1335 }
0x108e   :  { %v1338_v33 = vmul.f32 %v2799_v17, %v1336_v31 }
0x1090   :  { %1340 = vrot.lane.b32.xlu1 %v1338_v33, %s2896_s1 }
0x1094   :  { %1452 = vrot.lane.b32.xlu1 %v1338_v33, %s2898_s2 }
0x10fe   :  { %v1344_v34 = vpop.permute.xlu0 %1343 }
0x1102   :  { %v1341_v35 = vpop.permute.xlu1 %1340 }
0x1103   :  { %v1346_v36 = vsel %vm270_vm4, %v1341_v35, %v1344_v34 }
0x1104   :  { %2448 = vmatmul.mubr.msk.f32.vlgmr.msra.gmra.mrb[12].mxu1 %vm272_vm5, %v1346_v36 }
0x1105   :  { %2678 = vmatpush3.bf16.msra.mxu1 %v2983_v4  ;;  %2496 = vmatprep.mubr.msk.f32.mxu1 %vm2895_vm1, %v2894_v8 }
0x1106   :  { %v1453_v38 = vpop.permute.xlu1 %1452  ;;  %2679 = vmatprep.subr.bf16.mxu1 %v2893_v3 }
0x1107   :  { %v1455_v40 = vsel %vm158_vm2, %v2092_v37, %v1453_v38 }
0x1108   :  { %2463 = vmatmul.mubr.msk.f32.vlgmr.msra.gmra.mrb[12].mxu0 %vm160_vm3, %v1455_v40 }
0x1109   :  { %2666 = vmatpush3.bf16.msra.mxu0 %v3058_v39  ;;  %2681 = vmatpush3.bf16.msra.mxu1 %v3001_v10 }
0x110a   :  { %2667 = vmatprep.subr.bf16.mxu0 %v2893_v3  ;;  %2481 = vmatprep.mubr.msk.f32.mxu0 %vm2895_vm1, %v2894_v8 }
0x110b   :  { %2682 = vmatprep.subr.bf16.mxu1 %v2893_v3 }
0x110d   :  { %2669 = vmatpush3.bf16.msra.mxu0 %v3064_v41  ;;  %2684 = vmatpush3.bf16.msra.mxu1 %v3020_v14 }
0x110e   :  { %2670 = vmatprep.subr.bf16.mxu0 %v2893_v3  ;;  %2685 = vmatprep.subr.bf16.mxu1 %v2893_v3 }
0x1111   :  { %2672 = vmatpush3.bf16.msra.mxu0 %v3075_v45 }
0x1112   :  { %2673 = vmatprep.subr.bf16.mxu0 %v2893_v3 }
0x1115   :  { %2675 = vmatpush3.bf16.msra.mxu0 %v3089_v49 }
0x11d7   :  { %v1416_v4 = vpop.f32.mrb[12].mxu1 }
0x11d8   :  { %v1417_v10 = vadd.f32 %v3124_v58, %v1416_v4  ;;  %v2449_v42 = vpop.f32.mrb[13].mxu1 }
0x11da   :  { %2804 = vtanh.f32 %v1417_v10  ;;  %v2091_v50 = vmul.f32 -1.442695, %v1417_v10 }
0x11db   :  { %v1525_v43 = vpop.f32.mrb[12].mxu0 }
0x11dc   :  { %v1526_v44 = vadd.f32 %v1525_v43, %v3041_v21  ;;  %v2464_v47 = vpop.f32.mrb[13].mxu0 }
0x11de   :  { %2806 = vtanh.f32 %v1526_v44  ;;  %v2094_v51 = vmul.f32 -1.442695, %v1526_v44 }
0x11df   :  { %2808 = vpow2.f32 %v2091_v50 }
0x11e0   :  { %2810 = vpow2.f32 %v2094_v51 }
0x11e4   :  { %v2805_v14 = vpop.eup %2804 }
0x11e5   :  { %1429 = vrot.lane.b32.xlu0 %v2805_v14, %s2897_s14 }
0x11e8   :  { %v2807_v48 = vpop.eup %2806 }
0x11e9   :  { %1538 = vrot.lane.b32.xlu1 %v2807_v48, %s2897_s14  ;;  %v2809_v52 = vpop.eup %2808 }
0x11ea   :  { %v1423_v53 = vadd.f32 1.0, %v2809_v52  ;;  %v2811_v54 = vpop.eup %2810 }
0x11eb   :  { %v1532_v55 = vadd.f32 1.0, %v2811_v54 }
0x11ec   :  { %2812 = vrcp.f32 %v1423_v53 }
0x11ed   :  { %2814 = vrcp.f32 %v1532_v55 }
0x11f6   :  { %v2813_v56 = vpop.eup %2812 }
0x11f7   :  { %v2815_v60 = vpop.eup %2814  ;;  %v1427_v0 = vmul.f32 %v2813_v56, %v3324_v23 }
0x11f8   :  { %v1536_v5 = vmul.f32 %v2815_v60, %v3328_v26 }
0x1257   :  { %v1430_v57 = vpop.permute.xlu0 %1429 }
0x1258   :  { %v1432_v59 = vmul.f32 %v2813_v56, %v1430_v57 }
0x125a   :  { %1434 = vrot.lane.b32.xlu0 %v1432_v59, %s2896_s1 }
0x125b   :  { %v1539_v62 = vpop.permute.xlu1 %1538 }
0x125c   :  { %v1541_v63 = vmul.f32 %v2815_v60, %v1539_v62 }
0x125e   :  { %1543 = vrot.lane.b32.xlu1 %v1541_v63, %s2896_s1 }
0x12cc   :  { %v1435_v1 = vpop.permute.xlu0 %1434 }
0x12cd   :  { %v3370_v2 = vadd.f32 %v1435_v1, %v1427_v0 }
0x12cf   :  { %2816 = vtanh.f32 %v3370_v2 }
0x12d0   :  { %v1544_v6 = vpop.permute.xlu1 %1543 }
0x12d1   :  { %v3374_v7 = vadd.f32 %v1544_v6, %v1536_v5 }
0x12d3   :  { %2818 = vtanh.f32 %v3374_v7 }
0x12d9   :  { %v2817_v9 = vpop.eup %2816 }
0x12da   :  { %1440 = vrot.lane.b32.xlu0 %v2817_v9, %s2897_s14 }
0x12dd   :  { %v2819_v11 = vpop.eup %2818 }
0x12de   :  { %1549 = vrot.lane.b32.xlu1 %v2819_v11, %s2897_s14 }
0x134c   :  { %v1441_v12 = vpop.permute.xlu0 %1440 }
0x134d   :  { %v3379_v13 = vmul.f32 %v2813_v56, %v1441_v12 }
0x134f   :  { %1557 = vrot.lane.b32.xlu1 %v3379_v13, %s2897_s14 }
0x1350   :  { %v1550_v15 = vpop.permute.xlu1 %1549 }
0x1351   :  { %v1552_v17 = vmul.f32 %v2815_v60, %v1550_v15  ;;  %v1913_v15 = vld [vmem:[%s3513_s9] sm:$0xff] }
0x1353   :  { %1554 = vrot.lane.b32.xlu0 %v1552_v17, %s2896_s1 }
0x1357   :  { %1666 = vrot.lane.b32.xlu0 %v1552_v17, %s2898_s2  ;;  %v1914_v17 = vld [vmem:[%s3513_s9 + $0x8] sm:$0xff] }
0x13c1   :  { %v1558_v18 = vpop.permute.xlu1 %1557 }
0x13c5   :  { %v1555_v19 = vpop.permute.xlu0 %1554 }
0x13c6   :  { %v1560_v20 = vsel %vm270_vm4, %v1555_v19, %v1558_v18  ;;  %v2697_v18 = vpack.c.bf16 %v1914_v17, %v1913_v15 }
0x13c7   :  { %2482 = vmatmul.mubr.msk.f32.vlgmr.msra.gmra.mrb[14].mxu0 %vm272_vm5, %v1560_v20 }
0x13c8   :  { %2698 = vmatprep.subr.bf16.mxu0 %v2697_v18 }
0x13c9   :  { %v1667_v23 = vpop.permute.xlu0 %1666  ;;  %2700 = vmatpush3.bf16.msra.mxu0 %v2697_v18 }
0x13ca   :  { %v1669_v24 = vsel %vm158_vm2, %v2097_v22, %v1667_v23 }
0x13cb   :  { %2497 = vmatmul.mubr.msk.f32.vlgmr.msra.gmra.mrb[14].mxu1 %vm160_vm3, %v1669_v24 }
0x13cc   :  { %2687 = vmatpush3.bf16.msra.mxu1 %v3058_v39  ;;  %2515 = vmatprep.mubr.msk.f32.mxu1 %vm2895_vm1, %v2894_v8 }
0x13cd   :  { %2688 = vmatprep.subr.bf16.mxu1 %v2893_v3 }
0x13d0   :  { %2690 = vmatpush3.bf16.msra.mxu1 %v3064_v41 }
0x13d1   :  { %2691 = vmatprep.subr.bf16.mxu1 %v2893_v3 }
0x13d4   :  { %2693 = vmatpush3.bf16.msra.mxu1 %v3075_v45 }
0x13d5   :  { %2694 = vmatprep.subr.bf16.mxu1 %v2893_v3 }
0x13d8   :  { %2696 = vmatpush3.bf16.msra.mxu1 %v3089_v49 }
0x149a   :  { %v1630_v25 = vpop.f32.mrb[14].mxu0 }
0x149b   :  { %v1631_v26 = vadd.f32 %v3124_v58, %v1630_v25  ;;  %v2483_v27 = vpop.f32.mrb[15].mxu0 }
0x149d   :  { %2820 = vtanh.f32 %v1631_v26  ;;  %v2096_v45 = vmul.f32 -1.442695, %v1631_v26 }
0x149e   :  { %v1739_v39 = vpop.f32.mrb[14].mxu1 }
0x149f   :  { %v1740_v8 = vadd.f32 %v1739_v39, %v3041_v21  ;;  %v2498_v28 = vpop.f32.mrb[15].mxu1 }
0x14a1   :  { %2822 = vtanh.f32 %v1740_v8  ;;  %v2099_v3 = vmul.f32 -1.442695, %v1740_v8 }
0x14a2   :  { %2824 = vpow2.f32 %v2096_v45 }
0x14a3   :  { %2826 = vpow2.f32 %v2099_v3 }
0x14a7   :  { %v2821_v29 = vpop.eup %2820 }
0x14a8   :  { %1643 = vrot.lane.b32.xlu1 %v2821_v29, %s2897_s14 }
0x14ab   :  { %v2823_v41 = vpop.eup %2822 }
0x14ac   :  { %1752 = vrot.lane.b32.xlu0 %v2823_v41, %s2897_s14  ;;  %v2825_v49 = vpop.eup %2824 }
0x14ad   :  { %v1637_v31 = vadd.f32 1.0, %v2825_v49  ;;  %v2827_v33 = vpop.eup %2826 }
0x14ae   :  { %v1746_v34 = vadd.f32 1.0, %v2827_v33 }
0x14af   :  { %2828 = vrcp.f32 %v1637_v31 }
0x14b0   :  { %2830 = vrcp.f32 %v1746_v34 }
0x14b9   :  { %v2829_v35 = vpop.eup %2828 }
0x14ba   :  { %v2831_v37 = vpop.eup %2830  ;;  %v1641_v4 = vmul.f32 %v2829_v35, %v3370_v2 }
0x14bb   :  { %v1750_v43 = vmul.f32 %v2831_v37, %v3374_v7 }
0x151a   :  { %v1644_v21 = vpop.permute.xlu1 %1643 }
0x151b   :  { %v1646_v36 = vmul.f32 %v2829_v35, %v1644_v21 }
0x151d   :  { %1648 = vrot.lane.b32.xlu1 %v1646_v36, %s2896_s1 }
0x151e   :  { %v1753_v38 = vpop.permute.xlu0 %1752 }
0x151f   :  { %v1755_v40 = vmul.f32 %v2831_v37, %v1753_v38 }
0x1521   :  { %1757 = vrot.lane.b32.xlu0 %v1755_v40, %s2896_s1 }
0x158f   :  { %v1649_v10 = vpop.permute.xlu1 %1648 }
0x1590   :  { %v1651_v42 = vadd.f32 %v1649_v10, %v1641_v4 }
0x1592   :  { %2832 = vtanh.f32 %v1651_v42 }
0x1593   :  { %v1758_v44 = vpop.permute.xlu0 %1757 }
0x1594   :  { %v1760_v47 = vadd.f32 %v1758_v44, %v1750_v43 }
0x1596   :  { %2834 = vtanh.f32 %v1760_v47 }
0x159c   :  { %v2833_v14 = vpop.eup %2832 }
0x159d   :  { %1654 = vrot.lane.b32.xlu1 %v2833_v14, %s2897_s14 }
0x15a0   :  { %v2835_v48 = vpop.eup %2834 }
0x15a1   :  { %1763 = vrot.lane.b32.xlu0 %v2835_v48, %s2897_s14 }
0x160f   :  { %v1655_v50 = vpop.permute.xlu1 %1654 }
0x1610   :  { %v1657_v51 = vmul.f32 %v2829_v35, %v1655_v50 }
0x1612   :  { %1771 = vrot.lane.b32.xlu0 %v1657_v51, %s2897_s14 }
0x1613   :  { %v1764_v52 = vpop.permute.xlu0 %1763 }
0x1614   :  { %v1766_v53 = vmul.f32 %v2831_v37, %v1764_v52 }
0x1616   :  { %1768 = vrot.lane.b32.xlu1 %v1766_v53, %s2896_s1 }
0x1684   :  { %v1772_v54 = vpop.permute.xlu0 %1771 }
0x1688   :  { %v1769_v55 = vpop.permute.xlu1 %1768 }
0x1689   :  { %v1774_v56 = vsel %vm270_vm4, %v1769_v55, %v1772_v54  ;;  %2008 = vst.msk [vmem:[#allocation3] sm:$0x3] %vm378_vm6, %v1769_v55 }
0x168a   :  { %2516 = vmatmul.mubr.msk.f32.vlgmr.msra.gmra.mrb[16].mxu1 %vm272_vm5, %v1774_v56 }
0x175d   :  { %v1844_v57 = vpop.f32.mrb[16].mxu1 }
0x175e   :  { %v1845_v59 = vadd.f32 %v3124_v58, %v1844_v57  ;;  %v2517_v60 = vpop.f32.mrb[17].mxu1 }
0x1760   :  { %2836 = vtanh.f32 %v1845_v59  ;;  %v2101_v63 = vmul.f32 -1.442695, %v1845_v59 }
0x1762   :  { %2838 = vpow2.f32 %v2101_v63 }
0x176a   :  { %v2837_v62 = vpop.eup %2836 }
0x176b   :  { %1857 = vrot.lane.b32.xlu1 %v2837_v62, %s2897_s14 }
0x176c   :  { %v2839_v0 = vpop.eup %2838 }
0x176d   :  { %v1851_v1 = vadd.f32 1.0, %v2839_v0 }
0x176f   :  { %2840 = vrcp.f32 %v1851_v1 }
0x1779   :  { %v2841_v2 = vpop.eup %2840 }
0x177a   :  { %v1855_v58 = vmul.f32 %v2841_v2, %v1651_v42 }
0x17dd   :  { %v1858_v5 = vpop.permute.xlu1 %1857 }
0x17de   :  { %v1860_v6 = vmul.f32 %v2841_v2, %v1858_v5 }
0x17e0   :  { %1862 = vrot.lane.b32.xlu0 %v1860_v6, %s2896_s1 }
0x17e4   :  { %589 = vrot.lane.b32.xlu0 %v3192_v16, %s2896_s1 }
0x17e8   :  { %1445 = vrot.lane.b32.xlu0 %v3379_v13, %s2896_s1 }
0x17ec   :  { %1017 = vrot.lane.b32.xlu0 %v3286_v46, %s2896_s1 }
0x17f0   :  { %1231 = vrot.lane.b32.xlu0 %v3333_v30, %s2896_s1 }
0x17f4   :  { %2010 = vrot.lane.b32.xlu0 %v1760_v47, %s2899_s0 }
0x1852   :  { %v1863_v7 = vpop.permute.xlu0 %1862 }
0x1853   :  { %v1865_v9 = vadd.f32 %v1863_v7, %v1855_v58 }
0x1855   :  { %2842 = vtanh.f32 %v1865_v9 }
0x1856   :  { %v590_v11 = vpop.permute.xlu0 %589 }
0x1857   :  { %593 = vst.msk [vmem:[#allocation2 + $0x2] sm:$0x3] %vm378_vm6, %v590_v11 }
0x185a   :  { %v1446_v16 = vpop.permute.xlu0 %1445 }
0x185b   :  { %1449 = vst.msk [vmem:[#allocation2 + $0xa] sm:$0x3] %vm378_vm6, %v1446_v16 }
0x185e   :  { %v1018_v12 = vpop.permute.xlu0 %1017  ;;  %v1879_v26 = vld [vmem:[#allocation2 + $0x2] sm:$0x3] }
0x185f   :  { %v2843_v13 = vpop.eup %2842  ;;  %1021 = vst.msk [vmem:[#allocation2 + $0x6] sm:$0x3] %vm378_vm6, %v1018_v12  ;;  %v1887_v8 = vrot.slane %v1879_v26, 6 }
0x1860   :  { %1868 = vrot.lane.b32.xlu1 %v2843_v13, %s2897_s14 }
0x1862   :  { %v1232_v46 = vpop.permute.xlu0 %1231  ;;  %v1883_v35 = vld [vmem:[#allocation2 + $0xa] sm:$0x3] }
0x1863   :  { %1235 = vst.msk [vmem:[#allocation2 + $0x8] sm:$0x3] %vm378_vm6, %v1232_v46  ;;  %v1896_v37 = vrot.slane %v1883_v35, 6 }
0x1864   :  { %803 = vrot.lane.b32.xlu1 %v3239_v61, %s2896_s1  ;;  %v1915_v61 = vld [vmem:[%s3513_s9 + $0x10] sm:$0xff] }
0x1866   :  { %v2011_v30 = vpop.permute.xlu0 %2010  ;;  %v1881_v39 = vld [vmem:[#allocation2 + $0x6] sm:$0x3] }
0x1867   :  { %2013 = vst.msk [vmem:[#allocation5] sm:$0x3] %vm378_vm6, %v2011_v30  ;;  %v1893_v41 = vrot.slane %v1881_v39, 2 }
0x1868   :  { %375 = vrot.lane.b32.xlu1 %v3145_v32, %s2896_s1  ;;  %v1916_v32 = vld [vmem:[%s3513_s9 + $0x18] sm:$0xff]  ;;  %s2900_s9 = smov [#allocation3]  }
0x1869   :  { %v2701_v19 = vpack.c.bf16 %v1916_v32, %v1915_v61  ;;  %s2029_s5 = sshll.u32 %s2900_s9, 4  ;;  %s2030_s5 = int_to_ptr.vmem [resolvable:$true] %s2029_s5 }
0x186a   :  { %v1882_v21 = vld [vmem:[#allocation2 + $0x8] sm:$0x3]  ;;  %s2844_s17 = scalar_lea.vmem %s2030_s5, 64  ;;  %p2849_p1 = scmp.lt.s32.totalorder %s2030_s5, %s2030_s5 }
0x186b   :  { %2702 = vmatprep.subr.bf16.mxu0 %v2701_v19  ;;  %v1910_v4 = vsel %vm1904_vm8, %v1882_v21, %v1896_v37  ;;  %p2845_p0 = scmp.ne.s32.totalorder %s2030_s5, %s2844_s17  ;;  %p2850_p2 = scmp.lt.s32.totalorder %s2844_s17, %s2844_s17 }
0x186c   :  { %1659 = vrot.lane.b32.xlu1 %v1657_v51, %s2896_s1  ;;  %2704 = vmatpush3.bf16.msra.mxu0 %v2701_v19 }
0x186d   :  { %p2851_p3 = por %p2850_p2, %p2849_p1 }
0x186f   :  { %p2852_p4 = pnand %p2851_p3, %p2845_p0 }
0x18d2   :  { %v1869_v20 = vpop.permute.xlu1 %1868 }
0x18d3   :  { %v1871_v22 = vmul.f32 %v2841_v2, %v1869_v20 }
0x18d5   :  { %1873 = vrot.lane.b32.xlu1 %v1871_v22, %s2896_s1 }
0x18d6   :  { %v804_v23 = vpop.permute.xlu1 %803 }
0x18d7   :  { %807 = vst.msk [vmem:[#allocation2 + $0x4] sm:$0x3] %vm378_vm6, %v804_v23 }
0x18d9   :  { %2017 = vrot.lane.b32.xlu1 %v1865_v9, %s2899_s0 }
0x18da   :  { %v376_v24 = vpop.permute.xlu1 %375 }
0x18db   :  { %379 = vst.msk [vmem:[#allocation2] sm:$0x3] %vm378_vm6, %v376_v24 }
0x18de   :  { %v1660_v25 = vpop.permute.xlu1 %1659  ;;  %v1880_v27 = vld [vmem:[#allocation2 + $0x4] sm:$0x3] }
0x18df   :  { %1663 = vst.msk [vmem:[#allocation2 + $0xc] sm:$0x3] %vm378_vm6, %v1660_v25  ;;  %v1890_v29 = vrot.slane %v1880_v27, 4 }
0x18e2   :  { %v1878_v28 = vld [vmem:[#allocation2] sm:$0x3] }
0x18e3   :  { %v1905_v45 = vsel %vm1904_vm8, %v1878_v28, %v1887_v8 }
0x18e4   :  { %v1907_v3 = vsel %vm1906_vm7, %v1905_v45, %v1890_v29 }
0x18e5   :  { %v1909_v49 = vsel %vm1908_vm9, %v1907_v3, %v1893_v41 }
0x18e6   :  { %2526 = vmatprep.mubr.msk.f32.mxu0 %vm270_vm4, %v1909_v49  ;;  %v1884_v33 = vld [vmem:[#allocation2 + $0xc] sm:$0x3] }
0x18e7   :  { %v1899_v36 = vrot.slane %v1884_v33, 4 }
0x18e9   :  { %v1911_v10 = vsel %vm1906_vm7, %v1910_v4, %v1899_v36 }
0x1947   :  { %v1874_v31 = vpop.permute.xlu1 %1873 }
0x1948   :  { %1877 = vst.msk [vmem:[#allocation2 + $0xe] sm:$0x3] %vm378_vm6, %v1874_v31  ;;  %2015 = vst.msk [vmem:[#allocation3 + $0x2] sm:$0x3] %vm378_vm6, %v1874_v31 }
0x194b   :  { %v2018_v34 = vpop.permute.xlu1 %2017 }
0x194c   :  { %2021 = vst.msk [vmem:[#allocation5 + $0x2] sm:$0x3] %vm378_vm6, %v2018_v34 }
0x194f   :  { %v1885_v38 = vld [vmem:[#allocation2 + $0xe] sm:$0x3] }
0x1950   :  { %v1902_v40 = vrot.slane %v1885_v38, 2 }
0x1952   :  { %v1912_v42 = vsel %vm1908_vm9, %v1911_v10, %v1902_v40 }
0x1953   :  { %2527 = vmatmul.mubr.msk.f32.vlgmr.msra.gmra.mrb[16].mxu0 %vm270_vm4, %v1912_v42 }
0x1954   :  { %2855 = shalt.err (!%p2852_p4)
}
0x1955   :  { %s2856_s18 = scalar_lea.hbm %s3516_s12, 64 }
0x1956   :  { %p2857_p5 = scmp.ne.s32.totalorder %s3516_s12, %s2856_s18  ;;  %p2860_p6 = scmp.lt.u32.totalorder %s2856_s18, %s3516_s12 }
0x1958   :  { %p2862_p7 = pnand %p2860_p6, %p2857_p5 }
0x195a   :  { %2865 = shalt.err (!%p2862_p7)
}
0x195b   :  { %s2902_s23 = smov 2   ;;  %s2866_s25 = scalar_lea.vmem %s2042_s16, 64 }
0x195c   :  { %2035 = dma.vmem_to_hbm [thread:$0]  %s2030_s5, 64, %s3516_s12, [#allocation4], %s2896_s1, %s2896_s1, %s2902_s23  }
0x195d   :  { %p2867_p8 = scmp.ne.s32.totalorder %s2042_s16, %s2866_s25  ;;  %p2871_p9 = scmp.lt.s32.totalorder %s2042_s16, %s2042_s16 }
0x195e   :  { %p2872_p10 = scmp.lt.s32.totalorder %s2866_s25, %s2866_s25 }
0x1960   :  { %p2873_p11 = por %p2872_p10, %p2871_p9 }
0x1962   :  { %p2874_p12 = pnand %p2873_p11, %p2867_p8 }
0x1964   :  { %2877 = shalt.err (!%p2874_p12)
}
0x1965   :  { %s2878_s27 = scalar_lea.hbm %s3517_s13, 64 }
0x1966   :  { %p2879_p13 = scmp.ne.s32.totalorder %s3517_s13, %s2878_s27  ;;  %p2882_p0 = scmp.lt.u32.totalorder %s2878_s27, %s3517_s13 }
0x1968   :  { %p2884_p1 = pnand %p2882_p0, %p2879_p13 }
0x196a   :  { %2887 = shalt.err (!%p2884_p1)
}
0x196b   :  { %2047 = dma.vmem_to_hbm [thread:$0]  %s2042_s16, 64, %s3517_s13, [#allocation6], %s2896_s1, %s2896_s1, %s2902_s23   ;;  %vm2005_vm10 = vcmask 326656  }
0x196c   :  { %v2102_v43 = vld [vmem:[%s3514_s10] ss:$0 sm:$0xff] }
0x1a26   :  { %v2528_v44 = vpop.f32.mrb[16].mxu0 }
0x1a27   :  { %v2002_v47 = vadd.f32 %v2528_v44, %v2102_v43  ;;  %v1996_v14 = vpop.f32.mrb[17].mxu0 }
0x1a28   :  { %v1997_v48 = vadd.f32 %v2102_v43, %v1996_v14 }
0x1a29   :  { %2007 = vst.msk [vmem:[%s3515_s11 + $0x8] sm:$0xff] %vm2005_vm10, %v2002_v47 }
0x1a2a   :  { %2006 = vst.msk [vmem:[%s3515_s11] sm:$0xff] %vm2005_vm10, %v1997_v48 }
0x1a2b   :  { %2888 = dma.done.wait [#allocation4], 64  }
0x1a2c   :  { %2889 = vsyncadd [#allocation4], 4294967232 }
0x1a2d   :  { %2890 = dma.done.wait [#allocation6], 64  }
0x1a2e   :  { %2891 = vsyncadd [#allocation6], 4294967232 }
0x1a2f   :  { %2056 = vsyncpa [#allocation4], 1 }
0x1a30   :  { %2057 = vsyncpa [#allocation6], 1 }

</bundles_post_ra>
